<compile_context>
chip_gen: v6e
topology: v6e:2x2x1
jax: 0.10.0
libtpu: 0.0.40
codegen_flags: <defaults>
</compile_context>

<pallas_src>
import functools

import jax
import jax.numpy as jnp
from jax.experimental import pallas as pl
from jax.experimental.pallas import tpu as pltpu


LANE = 128       # TPU lane width: K and Cout are padded to multiples of this.
TM_MAX = 1024    # upper bound on rows of the im2col matrix per grid step.

_VMEM_LIMIT_CACHE = None


def _round_up(v, m):
    return (v + m - 1) // m * m


def _vmem_limit():
    """min(64 MiB, physical VMEM / 2): 64 MiB on v5e/v6e, 32 MiB on v7x."""
    global _VMEM_LIMIT_CACHE
    if _VMEM_LIMIT_CACHE is None:
        cap = None
        try:
            cap = int(pltpu.get_tpu_info().vmem_capacity_bytes)
        except Exception:
            cap = None
        if not cap:
            cap = 64 * 1024 * 1024          # conservative fallback (v7x-class)
        _VMEM_LIMIT_CACHE = min(64 * 1024 * 1024, cap // 2)
    return _VMEM_LIMIT_CACHE


def _choose_tm(M, K, N, n_res_like):
    """Pick the M-tile: fits VMEM, multiple of 16, >=2 grid blocks when
    possible, and divides M exactly when possible (no pad round trip)."""
    # Double-buffered bf16 bytes per M-row: x tile + out tile + residual-like tiles.
    per_row = 2 * 2 * K + 2 * 2 * N * (1 + n_res_like)
    budget = _vmem_limit() // 2              # headroom for weights / regalloc
    cap = budget // max(per_row, 1)
    cap = max(16, min(TM_MAX, cap // 16 * 16))
    m16 = _round_up(M, 16)
    if m16 >= 32:                            # keep >= 2 blocks for megacore
        cap = min(cap, _round_up((m16 + 1) // 2, 16))
    cap = min(cap, m16)
    for cand in range(cap, 15, -16):         # prefer an exact divisor of M
        if M % cand == 0:
            return cand
    return cap


# ----------------------------------------------------------------------------
# Pallas kernels
# ----------------------------------------------------------------------------
def _mm_bn_kernel(x_ref, w_ref, shift_ref, o_ref, *, relu):
    """out = relu?( x @ w_scalefolded + shift )"""
    acc = jnp.dot(x_ref[...], w_ref[...], preferred_element_type=jnp.float32)
    out = acc + shift_ref[...]
    if relu:
        out = jnp.maximum(out, 0.0)
    o_ref[...] = out.astype(o_ref.dtype)


def _mm_bn_res_kernel(x_ref, w_ref, shift_ref, res_ref, o_ref, *, relu):
    """out = relu?( x @ w + shift + residual )   (identity shortcut)"""
    acc = jnp.dot(x_ref[...], w_ref[...], preferred_element_type=jnp.float32)
    out = acc + shift_ref[...] + res_ref[...].astype(jnp.float32)
    if relu:
        out = jnp.maximum(out, 0.0)
    o_ref[...] = out.astype(o_ref.dtype)


def _mm_bn_shortcut_kernel(x_ref, w_ref, shift_ref, xs_ref, wsc_ref, shiftsc_ref,
                           o_ref, *, relu):
    """out = relu?( x @ w + shift + (xs @ wsc + shift_sc) )
    The 1x1 stride-2 projection shortcut (+ its BN) is fused as a second
    MXU matmul instead of a separate pallas_call + HBM round trip."""
    acc = jnp.dot(x_ref[...], w_ref[...], preferred_element_type=jnp.float32)
    sc = jnp.dot(xs_ref[...], wsc_ref[...], preferred_element_type=jnp.float32)
    out = acc + shift_ref[...] + sc + shiftsc_ref[...]
    if relu:
        out = jnp.maximum(out, 0.0)
    o_ref[...] = out.astype(o_ref.dtype)


def _pool_fc_kernel(x_ref, w_ref, b_ref, o_ref):
    """Global average pool over the spatial axis followed by Linear (bf16 MXU)."""
    x = x_ref[...].astype(jnp.float32)                       # (N, HW, C)
    pooled = (jnp.sum(x, axis=1) * (1.0 / x.shape[1])).astype(jnp.bfloat16)
    o_ref[...] = jnp.dot(pooled, w_ref[...],
                         preferred_element_type=jnp.float32) + b_ref[...]


# ----------------------------------------------------------------------------
# Fused matmul + folded BN (+identity residual | +fused 1x1 shortcut) (+ReLU)
# ----------------------------------------------------------------------------
def fused_matmul_bn(x, w, shift, residual=None, shortcut=None, relu=True):
    """x: (M, K) bf16, w: (K, Npad) bf16 (BN-scale folded), shift: (Npad,) f32.
    residual: (M, Npad) bf16 or None.
    shortcut: (xs (M, Ksc) bf16, wsc (Ksc, Npad) bf16, shift_sc (Npad,) f32) or None.
    Returns (M, Npad) bf16."""
    M, K = x.shape
    N = w.shape[1]
    n_res_like = (1 if residual is not None else 0) + (1 if shortcut is not None else 0)
    tm = _choose_tm(M, K, N, n_res_like)
    Mp = _round_up(M, tm)
    pad = Mp - M
    if pad:                                   # rare: tm normally divides M
        x = jnp.pad(x, ((0, pad), (0, 0)))
        if residual is not None:
            residual = jnp.pad(residual, ((0, pad), (0, 0)))
        if shortcut is not None:
            xs_, wsc_, ssc_ = shortcut
            shortcut = (jnp.pad(xs_, ((0, pad), (0, 0))), wsc_, ssc_)

    shift2 = shift.reshape(1, N)

    in_specs = [
        pl.BlockSpec((tm, K), lambda i: (i, 0)),   # activations: tiled on M
        pl.BlockSpec((K, N), lambda i: (0, 0)),    # weights: replicated
        pl.BlockSpec((1, N), lambda i: (0, 0)),    # BN shift: replicated
    ]
    args = [x, w, shift2]
    flops = 2 * Mp * K * N
    bytes_accessed = Mp * K * 2 + K * N * 2 + N * 4 + Mp * N * 2

    if residual is not None:
        in_specs.append(pl.BlockSpec((tm, N), lambda i: (i, 0)))
        args.append(residual)
        kernel = functools.partial(_mm_bn_res_kernel, relu=relu)
        bytes_accessed += Mp * N * 2
    elif shortcut is not None:
        xs, wsc, ssc = shortcut
        Ksc = xs.shape[1]
        in_specs += [
            pl.BlockSpec((tm, Ksc), lambda i: (i, 0)),   # shortcut input rows
            pl.BlockSpec((Ksc, N), lambda i: (0, 0)),    # 1x1 shortcut weight
            pl.BlockSpec((1, N), lambda i: (0, 0)),      # shortcut BN shift
        ]
        args += [xs, wsc, ssc.reshape(1, N)]
        kernel = functools.partial(_mm_bn_shortcut_kernel, relu=relu)
        flops += 2 * Mp * Ksc * N
        bytes_accessed += Mp * Ksc * 2 + Ksc * N * 2 + N * 4
    else:
        kernel = functools.partial(_mm_bn_kernel, relu=relu)

    out = pl.pallas_call(
        kernel,
        out_shape=jax.ShapeDtypeStruct((Mp, N), jnp.bfloat16),
        grid=(Mp // tm,),
        in_specs=in_specs,
        out_specs=pl.BlockSpec((tm, N), lambda i: (i, 0)),
        compiler_params=pltpu.CompilerParams(
            dimension_semantics=("parallel",),
            vmem_limit_bytes=_vmem_limit()),
        cost_estimate=pl.CostEstimate(flops=int(flops), transcendentals=0,
                                      bytes_accessed=int(bytes_accessed)),
    )(*args)

    return out[:M] if pad else out


def pool_fc(x, w, b):
    """x: (N, HW, Cpad) bf16, w: (Cpad, ncp) bf16, b: (ncp,) f32 -> (N, ncp) f32."""
    n, hw, c = x.shape
    nc = w.shape[1]
    return pl.pallas_call(
        _pool_fc_kernel,
        out_shape=jax.ShapeDtypeStruct((n, nc), jnp.float32),
        grid=(1,),
        in_specs=[
            pl.BlockSpec((n, hw, c), lambda i: (0, 0, 0)),
            pl.BlockSpec((c, nc), lambda i: (0, 0)),
            pl.BlockSpec((1, nc), lambda i: (0, 0)),
        ],
        out_specs=pl.BlockSpec((n, nc), lambda i: (0, 0)),
        compiler_params=pltpu.CompilerParams(
            dimension_semantics=("arbitrary",),
            vmem_limit_bytes=_vmem_limit()),
    )(x, w, b.reshape(1, nc))


# ----------------------------------------------------------------------------
# Plain-JAX glue: im2col, layer wrappers, parameter construction
# ----------------------------------------------------------------------------
def extract_patches_3x3(x, stride, cin, kpad):
    """x: (N, H, W, C>=cin) NHWC bf16, padding=1.  Uses only the first `cin`
    channels (padded channels of the stored activation are skipped), and
    zero-pads the flattened patch dim 9*cin up to `kpad` (a multiple of 128).
    Returns ((N*Ho*Wo, kpad), (N, Ho, Wo))."""
    n, h, w, _ = x.shape
    ho = (h + 2 - 3) // stride + 1
    wo = (w + 2 - 3) // stride + 1
    xp = jnp.pad(x[..., :cin], ((0, 0), (1, 1), (1, 1), (0, 0)))
    cols = []
    for ky in range(3):
        for kx in range(3):
            sl = xp[:, ky: ky + (ho - 1) * stride + 1: stride,
                    kx: kx + (wo - 1) * stride + 1: stride, :]
            cols.append(sl)
    if kpad > 9 * cin:
        cols.append(jnp.zeros((n, ho, wo, kpad - 9 * cin), x.dtype))
    patches = jnp.concatenate(cols, axis=-1)             # (N, Ho, Wo, kpad)
    return patches.reshape(n * ho * wo, kpad), (n, ho, wo)


def conv3x3_bn_act(x, p, stride=1, residual2d=None, shortcut=None, relu=True):
    """3x3 conv (pad=1) + folded BN (+residual | +fused shortcut) (+ReLU)."""
    patches, (n, ho, wo) = extract_patches_3x3(x, stride, p['cin'], p['kpad'])
    out = fused_matmul_bn(patches, p['w'], p['shift'],
                          residual=residual2d, shortcut=shortcut, relu=relu)
    return out.reshape(n, ho, wo, out.shape[-1])


def cifar_resnet_forward(params, x_nchw):
    x = jnp.transpose(x_nchw, (0, 2, 3, 1)).astype(jnp.bfloat16)   # NCHW -> NHWC bf16
    out = conv3x3_bn_act(x, params['stem'], stride=1, relu=True)
    for bp in params['blocks']:
        stride = 2 if bp['downsample'] else 1
        h = conv3x3_bn_act(out, bp['c1'], stride=stride, relu=True)
        if bp['has_shortcut']:
            # PyTorch shortcut: Conv2d(kernel=1, stride=2) + BN, fused into conv2.
            xs = out[:, ::2, ::2, :]
            n2, h2, w2_, c2 = xs.shape
            shortcut = (xs.reshape(n2 * h2 * w2_, c2),
                        bp['sc']['w'], bp['sc']['shift'])
            out = conv3x3_bn_act(h, bp['c2'], stride=1, shortcut=shortcut, relu=True)
        else:
            res2d = out.reshape(-1, out.shape[-1])
            out = conv3x3_bn_act(h, bp['c2'], stride=1, residual2d=res2d, relu=True)
    n, hh, ww, c = out.shape
    # F.avg_pool2d(out, out.size()[3]) on a square map == global average pool.
    logits_pad = pool_fc(out.reshape(n, hh * ww, c), params['fc_w'], params['fc_b'])
    return logits_pad[:, :params['num_classes']]


def make_params(key, plan, num_classes=10):
    keys = iter(jax.random.split(key, 512))

    def nrm(shape, s=0.1):
        return (s * jax.random.normal(next(keys), shape)).astype(jnp.float32)

    def bn_fold(c):
        """Inference-mode BN folded into per-channel (scale, shift)."""
        eps = 1e-5
        gamma = 1.0 + 0.05 * jax.random.normal(next(keys), (c,))
        beta = 0.05 * jax.random.normal(next(keys), (c,))
        rmean = 0.05 * jax.random.normal(next(keys), (c,))
        rvar = 0.9 + 0.2 * jnp.abs(jax.random.normal(next(keys), (c,)))
        scale = (gamma / jnp.sqrt(rvar + eps)).astype(jnp.float32)
        shift = (beta - rmean * scale).astype(jnp.float32)
        return scale, shift

    def conv3x3(cin, cout, cout_pad):
        """Prepacked (kpad, cout_pad) bf16 weight with BN scale folded in."""
        w = nrm((3, 3, cin, cout))
        scale, shift = bn_fold(cout)
        w2d = (w * scale.reshape(1, 1, 1, cout)).reshape(9 * cin, cout)
        kpad = _round_up(9 * cin, LANE)
        w2d = jnp.pad(w2d, ((0, kpad - 9 * cin),
                            (0, cout_pad - cout))).astype(jnp.bfloat16)
        return {'w': w2d,
                'shift': jnp.pad(shift, (0, cout_pad - cout)).astype(jnp.float32),
                'cin': cin, 'kpad': kpad}

    def conv1x1(cin, cin_pad, cout, cout_pad):
        w = nrm((cin, cout))
        scale, shift = bn_fold(cout)
        w = w * scale.reshape(1, cout)
        w = jnp.pad(w, ((0, cin_pad - cin),
                        (0, cout_pad - cout))).astype(jnp.bfloat16)
        return {'w': w,
                'shift': jnp.pad(shift, (0, cout_pad - cout)).astype(jnp.float32)}

    params = {'num_classes': num_classes}
    c0 = plan[0][0]
    c0p = _round_up(c0, LANE)
    params['stem'] = conv3x3(3, c0, c0p)

    blocks = []
    cur, curp = c0, c0p
    for seg_idx, (filters, nblk) in enumerate(plan):
        fp = _round_up(filters, LANE)
        for blk_idx in range(nblk):
            downsample = seg_idx > 0 and blk_idx == 0
            bp = {'downsample': downsample,
                  'has_shortcut': downsample or cur != filters}
            bp['c1'] = conv3x3(cur, filters, fp)
            bp['c2'] = conv3x3(filters, filters, fp)
            if bp['has_shortcut']:
                bp['sc'] = conv1x1(cur, curp, filters, fp)
            blocks.append(bp)
            cur, curp = filters, fp
    params['blocks'] = blocks

    ncp = _round_up(num_classes, LANE)
    fcw = nrm((cur, num_classes))                          # transposed vs. PyTorch
    params['fc_w'] = jnp.pad(fcw, ((0, curp - cur),
                                   (0, ncp - num_classes))).astype(jnp.bfloat16)
    params['fc_b'] = jnp.pad(nrm((num_classes,), s=0.01),
                             (0, ncp - num_classes)).astype(jnp.float32)
    return params


if __name__ == "__main__":
    key = jax.random.PRNGKey(0)
    pkey, xkey = jax.random.split(key)

    # Small ResNet plan consistent with the module (3 segments, 1 block each,
    # width doubling + downsample at segment boundaries), 10 output classes.
    plan = [(8, 1), (16, 1), (32, 1)]
    params = make_params(pkey, plan, num_classes=10)

    x = jax.random.normal(xkey, (2, 3, 16, 16), jnp.float32)   # NCHW input

    fwd = jax.jit(functools.partial(cifar_resnet_forward, params))
    logits = fwd(x)
    jax.block_until_ready(logits)
    assert logits.shape == (2, 10), logits.shape
    print("KERNEL_OK")
</pallas_src>

<mosaic_0001>
module attributes {stable_mosaic.version = 11 : i64} {
  func.func @_mm_bn_kernel(%arg0: i32, %arg1: memref<256x128xbf16, #tpu.memory_space<vmem>>, %arg2: memref<128x128xbf16, #tpu.memory_space<vmem>>, %arg3: memref<1x128xf32, #tpu.memory_space<vmem>>, %arg4: memref<256x128xbf16, #tpu.memory_space<vmem>>) attributes {dimension_semantics = [#tpu.dimension_semantics<parallel>], iteration_bounds = array<i64: 2>, scalar_prefetch = 0 : i64, scratch_operands = 0 : i64, tpu.core_type = #tpu.core_type<tc>, window_params = [{transform_indices = @transform_0, window_bounds = array<i64: 256, 128>}, {pipeline_mode = #tpu.pipeline_mode<synchronous>, transform_indices = @transform_1, window_bounds = array<i64: 128, 128>}, {pipeline_mode = #tpu.pipeline_mode<synchronous>, transform_indices = @transform_2, window_bounds = array<i64: 1, 128>}, {transform_indices = @transform_3, window_bounds = array<i64: 256, 128>}]} {
    %c0 = arith.constant 0 : index
    %c0_0 = arith.constant 0 : index
    %0 = vector.load %arg1[%c0, %c0_0] : memref<256x128xbf16, #tpu.memory_space<vmem>>, vector<256x128xbf16>
    %c0_1 = arith.constant 0 : index
    %c0_2 = arith.constant 0 : index
    %1 = vector.load %arg2[%c0_1, %c0_2] : memref<128x128xbf16, #tpu.memory_space<vmem>>, vector<128x128xbf16>
    %cst = arith.constant dense<0.000000e+00> : vector<256x128xf32>
    %2 = tpu.matmul %0, %1, %cst {dimension_numbers = #tpu.dot_dimension_numbers<[1], [0], [0], [1], [0, 0, 1, 1], [], []>} : vector<256x128xbf16>, vector<128x128xbf16>, vector<256x128xf32> -> vector<256x128xf32>
    %c0_3 = arith.constant 0 : index
    %c0_4 = arith.constant 0 : index
    %3 = vector.load %arg3[%c0_3, %c0_4] : memref<1x128xf32, #tpu.memory_space<vmem>>, vector<1x128xf32>
    %4 = vector.broadcast %3 : vector<1x128xf32> to vector<256x128xf32>
    %5 = arith.addf %2, %4 : vector<256x128xf32>
    %cst_5 = arith.constant 0.000000e+00 : f32
    %6 = vector.broadcast %cst_5 : f32 to vector<256x128xf32>
    %7 = arith.maximumf %5, %6 : vector<256x128xf32>
    %8 = arith.truncf %7 : vector<256x128xf32> to vector<256x128xbf16>
    %c0_6 = arith.constant 0 : index
    %c0_7 = arith.constant 0 : index
    %9 = vector.load %arg4[%c0_6, %c0_7] : memref<256x128xbf16, #tpu.memory_space<vmem>>, vector<256x128xbf16>
    tpu.vector_store %arg4[%c0_6, %c0_7], %8 {strides = array<i32>} : memref<256x128xbf16, #tpu.memory_space<vmem>>, vector<256x128xbf16>,
    return
  }
  func.func @transform_0(%arg0: i32) -> (i32, i32) {
    %c0_i32 = arith.constant 0 : i32
    %c0_i32_0 = arith.constant 0 : i32
    return %arg0, %c0_i32 : i32, i32
  }
  func.func @transform_1(%arg0: i32) -> (i32, i32) {
    %c0_i32 = arith.constant 0 : i32
    %c0_i32_0 = arith.constant 0 : i32
    %c0_i32_1 = arith.constant 0 : i32
    return %c0_i32, %c0_i32_0 : i32, i32
  }
  func.func @transform_2(%arg0: i32) -> (i32, i32) {
    %c0_i32 = arith.constant 0 : i32
    %c0_i32_0 = arith.constant 0 : i32
    %c0_i32_1 = arith.constant 0 : i32
    return %c0_i32, %c0_i32_0 : i32, i32
  }
  func.func @transform_3(%arg0: i32) -> (i32, i32) {
    %c0_i32 = arith.constant 0 : i32
    %c0_i32_0 = arith.constant 0 : i32
    return %arg0, %c0_i32 : i32, i32
  }
}

module attributes {stable_mosaic.version = 11 : i64} {
  func.func @_mm_bn_res_kernel(%arg0: i32, %arg1: memref<256x128xbf16, #tpu.memory_space<vmem>>, %arg2: memref<128x128xbf16, #tpu.memory_space<vmem>>, %arg3: memref<1x128xf32, #tpu.memory_space<vmem>>, %arg4: memref<256x128xbf16, #tpu.memory_space<vmem>>, %arg5: memref<256x128xbf16, #tpu.memory_space<vmem>>) attributes {dimension_semantics = [#tpu.dimension_semantics<parallel>], iteration_bounds = array<i64: 2>, scalar_prefetch = 0 : i64, scratch_operands = 0 : i64, tpu.core_type = #tpu.core_type<tc>, window_params = [{transform_indices = @transform_0, window_bounds = array<i64: 256, 128>}, {pipeline_mode = #tpu.pipeline_mode<synchronous>, transform_indices = @transform_1, window_bounds = array<i64: 128, 128>}, {pipeline_mode = #tpu.pipeline_mode<synchronous>, transform_indices = @transform_2, window_bounds = array<i64: 1, 128>}, {transform_indices = @transform_3, window_bounds = array<i64: 256, 128>}, {transform_indices = @transform_4, window_bounds = array<i64: 256, 128>}]} {
    %c0 = arith.constant 0 : index
    %c0_0 = arith.constant 0 : index
    %0 = vector.load %arg1[%c0, %c0_0] : memref<256x128xbf16, #tpu.memory_space<vmem>>, vector<256x128xbf16>
    %c0_1 = arith.constant 0 : index
    %c0_2 = arith.constant 0 : index
    %1 = vector.load %arg2[%c0_1, %c0_2] : memref<128x128xbf16, #tpu.memory_space<vmem>>, vector<128x128xbf16>
    %cst = arith.constant dense<0.000000e+00> : vector<256x128xf32>
    %2 = tpu.matmul %0, %1, %cst {dimension_numbers = #tpu.dot_dimension_numbers<[1], [0], [0], [1], [0, 0, 1, 1], [], []>} : vector<256x128xbf16>, vector<128x128xbf16>, vector<256x128xf32> -> vector<256x128xf32>
    %c0_3 = arith.constant 0 : index
    %c0_4 = arith.constant 0 : index
    %3 = vector.load %arg3[%c0_3, %c0_4] : memref<1x128xf32, #tpu.memory_space<vmem>>, vector<1x128xf32>
    %4 = vector.broadcast %3 : vector<1x128xf32> to vector<256x128xf32>
    %5 = arith.addf %2, %4 : vector<256x128xf32>
    %c0_5 = arith.constant 0 : index
    %c0_6 = arith.constant 0 : index
    %6 = vector.load %arg4[%c0_5, %c0_6] : memref<256x128xbf16, #tpu.memory_space<vmem>>, vector<256x128xbf16>
    %7 = arith.extf %6 : vector<256x128xbf16> to vector<256x128xf32>
    %8 = arith.addf %5, %7 : vector<256x128xf32>
    %cst_7 = arith.constant 0.000000e+00 : f32
    %9 = vector.broadcast %cst_7 : f32 to vector<256x128xf32>
    %10 = arith.maximumf %8, %9 : vector<256x128xf32>
    %11 = arith.truncf %10 : vector<256x128xf32> to vector<256x128xbf16>
    %c0_8 = arith.constant 0 : index
    %c0_9 = arith.constant 0 : index
    %12 = vector.load %arg5[%c0_8, %c0_9] : memref<256x128xbf16, #tpu.memory_space<vmem>>, vector<256x128xbf16>
    tpu.vector_store %arg5[%c0_8, %c0_9], %11 {strides = array<i32>} : memref<256x128xbf16, #tpu.memory_space<vmem>>, vector<256x128xbf16>,
    return
  }
  func.func @transform_0(%arg0: i32) -> (i32, i32) {
    %c0_i32 = arith.constant 0 : i32
    %c0_i32_0 = arith.constant 0 : i32
    return %arg0, %c0_i32 : i32, i32
  }
  func.func @transform_1(%arg0: i32) -> (i32, i32) {
    %c0_i32 = arith.constant 0 : i32
    %c0_i32_0 = arith.constant 0 : i32
    %c0_i32_1 = arith.constant 0 : i32
    return %c0_i32, %c0_i32_0 : i32, i32
  }
  func.func @transform_2(%arg0: i32) -> (i32, i32) {
    %c0_i32 = arith.constant 0 : i32
    %c0_i32_0 = arith.constant 0 : i32
    %c0_i32_1 = arith.constant 0 : i32
    return %c0_i32, %c0_i32_0 : i32, i32
  }
  func.func @transform_3(%arg0: i32) -> (i32, i32) {
    %c0_i32 = arith.constant 0 : i32
    %c0_i32_0 = arith.constant 0 : i32
    return %arg0, %c0_i32 : i32, i32
  }
  func.func @transform_4(%arg0: i32) -> (i32, i32) {
    %c0_i32 = arith.constant 0 : i32
    %c0_i32_0 = arith.constant 0 : i32
    return %arg0, %c0_i32 : i32, i32
  }
}

module attributes {stable_mosaic.version = 11 : i64} {
  func.func @_mm_bn_kernel(%arg0: i32, %arg1: memref<64x128xbf16, #tpu.memory_space<vmem>>, %arg2: memref<128x128xbf16, #tpu.memory_space<vmem>>, %arg3: memref<1x128xf32, #tpu.memory_space<vmem>>, %arg4: memref<64x128xbf16, #tpu.memory_space<vmem>>) attributes {dimension_semantics = [#tpu.dimension_semantics<parallel>], iteration_bounds = array<i64: 2>, scalar_prefetch = 0 : i64, scratch_operands = 0 : i64, tpu.core_type = #tpu.core_type<tc>, window_params = [{transform_indices = @transform_0, window_bounds = array<i64: 64, 128>}, {pipeline_mode = #tpu.pipeline_mode<synchronous>, transform_indices = @transform_1, window_bounds = array<i64: 128, 128>}, {pipeline_mode = #tpu.pipeline_mode<synchronous>, transform_indices = @transform_2, window_bounds = array<i64: 1, 128>}, {transform_indices = @transform_3, window_bounds = array<i64: 64, 128>}]} {
    %c0 = arith.constant 0 : index
    %c0_0 = arith.constant 0 : index
    %0 = vector.load %arg1[%c0, %c0_0] : memref<64x128xbf16, #tpu.memory_space<vmem>>, vector<64x128xbf16>
    %c0_1 = arith.constant 0 : index
    %c0_2 = arith.constant 0 : index
    %1 = vector.load %arg2[%c0_1, %c0_2] : memref<128x128xbf16, #tpu.memory_space<vmem>>, vector<128x128xbf16>
    %cst = arith.constant dense<0.000000e+00> : vector<64x128xf32>
    %2 = tpu.matmul %0, %1, %cst {dimension_numbers = #tpu.dot_dimension_numbers<[1], [0], [0], [1], [0, 0, 1, 1], [], []>} : vector<64x128xbf16>, vector<128x128xbf16>, vector<64x128xf32> -> vector<64x128xf32>
    %c0_3 = arith.constant 0 : index
    %c0_4 = arith.constant 0 : index
    %3 = vector.load %arg3[%c0_3, %c0_4] : memref<1x128xf32, #tpu.memory_space<vmem>>, vector<1x128xf32>
    %4 = vector.broadcast %3 : vector<1x128xf32> to vector<64x128xf32>
    %5 = arith.addf %2, %4 : vector<64x128xf32>
    %cst_5 = arith.constant 0.000000e+00 : f32
    %6 = vector.broadcast %cst_5 : f32 to vector<64x128xf32>
    %7 = arith.maximumf %5, %6 : vector<64x128xf32>
    %8 = arith.truncf %7 : vector<64x128xf32> to vector<64x128xbf16>
    %c0_6 = arith.constant 0 : index
    %c0_7 = arith.constant 0 : index
    %9 = vector.load %arg4[%c0_6, %c0_7] : memref<64x128xbf16, #tpu.memory_space<vmem>>, vector<64x128xbf16>
    tpu.vector_store %arg4[%c0_6, %c0_7], %8 {strides = array<i32>} : memref<64x128xbf16, #tpu.memory_space<vmem>>, vector<64x128xbf16>,
    return
  }
  func.func @transform_0(%arg0: i32) -> (i32, i32) {
    %c0_i32 = arith.constant 0 : i32
    %c0_i32_0 = arith.constant 0 : i32
    return %arg0, %c0_i32 : i32, i32
  }
  func.func @transform_1(%arg0: i32) -> (i32, i32) {
    %c0_i32 = arith.constant 0 : i32
    %c0_i32_0 = arith.constant 0 : i32
    %c0_i32_1 = arith.constant 0 : i32
    return %c0_i32, %c0_i32_0 : i32, i32
  }
  func.func @transform_2(%arg0: i32) -> (i32, i32) {
    %c0_i32 = arith.constant 0 : i32
    %c0_i32_0 = arith.constant 0 : i32
    %c0_i32_1 = arith.constant 0 : i32
    return %c0_i32, %c0_i32_0 : i32, i32
  }
  func.func @transform_3(%arg0: i32) -> (i32, i32) {
    %c0_i32 = arith.constant 0 : i32
    %c0_i32_0 = arith.constant 0 : i32
    return %arg0, %c0_i32 : i32, i32
  }
}

module attributes {stable_mosaic.version = 11 : i64} {
  func.func @_mm_bn_shortcut_kernel(%arg0: i32, %arg1: memref<64x256xbf16, #tpu.memory_space<vmem>>, %arg2: memref<256x128xbf16, #tpu.memory_space<vmem>>, %arg3: memref<1x128xf32, #tpu.memory_space<vmem>>, %arg4: memref<64x128xbf16, #tpu.memory_space<vmem>>, %arg5: memref<128x128xbf16, #tpu.memory_space<vmem>>, %arg6: memref<1x128xf32, #tpu.memory_space<vmem>>, %arg7: memref<64x128xbf16, #tpu.memory_space<vmem>>) attributes {dimension_semantics = [#tpu.dimension_semantics<parallel>], iteration_bounds = array<i64: 2>, scalar_prefetch = 0 : i64, scratch_operands = 0 : i64, tpu.core_type = #tpu.core_type<tc>, window_params = [{transform_indices = @transform_0, window_bounds = array<i64: 64, 256>}, {pipeline_mode = #tpu.pipeline_mode<synchronous>, transform_indices = @transform_1, window_bounds = array<i64: 256, 128>}, {pipeline_mode = #tpu.pipeline_mode<synchronous>, transform_indices = @transform_2, window_bounds = array<i64: 1, 128>}, {transform_indices = @transform_3, window_bounds = array<i64: 64, 128>}, {pipeline_mode = #tpu.pipeline_mode<synchronous>, transform_indices = @transform_4, window_bounds = array<i64: 128, 128>}, {pipeline_mode = #tpu.pipeline_mode<synchronous>, transform_indices = @transform_5, window_bounds = array<i64: 1, 128>}, {transform_indices = @transform_6, window_bounds = array<i64: 64, 128>}]} {
    %c0 = arith.constant 0 : index
    %c0_0 = arith.constant 0 : index
    %0 = vector.load %arg1[%c0, %c0_0] : memref<64x256xbf16, #tpu.memory_space<vmem>>, vector<64x256xbf16>
    %c0_1 = arith.constant 0 : index
    %c0_2 = arith.constant 0 : index
    %1 = vector.load %arg2[%c0_1, %c0_2] : memref<256x128xbf16, #tpu.memory_space<vmem>>, vector<256x128xbf16>
    %cst = arith.constant dense<0.000000e+00> : vector<64x128xf32>
    %2 = tpu.matmul %0, %1, %cst {dimension_numbers = #tpu.dot_dimension_numbers<[1], [0], [0], [1], [0, 0, 1, 1], [], []>} : vector<64x256xbf16>, vector<256x128xbf16>, vector<64x128xf32> -> vector<64x128xf32>
    %c0_3 = arith.constant 0 : index
    %c0_4 = arith.constant 0 : index
    %3 = vector.load %arg4[%c0_3, %c0_4] : memref<64x128xbf16, #tpu.memory_space<vmem>>, vector<64x128xbf16>
    %c0_5 = arith.constant 0 : index
    %c0_6 = arith.constant 0 : index
    %4 = vector.load %arg5[%c0_5, %c0_6] : memref<128x128xbf16, #tpu.memory_space<vmem>>, vector<128x128xbf16>
    %cst_7 = arith.constant dense<0.000000e+00> : vector<64x128xf32>
    %5 = tpu.matmul %3, %4, %cst_7 {dimension_numbers = #tpu.dot_dimension_numbers<[1], [0], [0], [1], [0, 0, 1, 1], [], []>} : vector<64x128xbf16>, vector<128x128xbf16>, vector<64x128xf32> -> vector<64x128xf32>
    %c0_8 = arith.constant 0 : index
    %c0_9 = arith.constant 0 : index
    %6 = vector.load %arg3[%c0_8, %c0_9] : memref<1x128xf32, #tpu.memory_space<vmem>>, vector<1x128xf32>
    %7 = vector.broadcast %6 : vector<1x128xf32> to vector<64x128xf32>
    %8 = arith.addf %2, %7 : vector<64x128xf32>
    %9 = arith.addf %8, %5 : vector<64x128xf32>
    %c0_10 = arith.constant 0 : index
    %c0_11 = arith.constant 0 : index
    %10 = vector.load %arg6[%c0_10, %c0_11] : memref<1x128xf32, #tpu.memory_space<vmem>>, vector<1x128xf32>
    %11 = vector.broadcast %10 : vector<1x128xf32> to vector<64x128xf32>
    %12 = arith.addf %9, %11 : vector<64x128xf32>
    %cst_12 = arith.constant 0.000000e+00 : f32
    %13 = vector.broadcast %cst_12 : f32 to vector<64x128xf32>
    %14 = arith.maximumf %12, %13 : vector<64x128xf32>
    %15 = arith.truncf %14 : vector<64x128xf32> to vector<64x128xbf16>
    %c0_13 = arith.constant 0 : index
    %c0_14 = arith.constant 0 : index
    %16 = vector.load %arg7[%c0_13, %c0_14] : memref<64x128xbf16, #tpu.memory_space<vmem>>, vector<64x128xbf16>
    tpu.vector_store %arg7[%c0_13, %c0_14], %15 {strides = array<i32>} : memref<64x128xbf16, #tpu.memory_space<vmem>>, vector<64x128xbf16>,
    return
  }
  func.func @transform_0(%arg0: i32) -> (i32, i32) {
    %c0_i32 = arith.constant 0 : i32
    %c0_i32_0 = arith.constant 0 : i32
    return %arg0, %c0_i32 : i32, i32
  }
  func.func @transform_1(%arg0: i32) -> (i32, i32) {
    %c0_i32 = arith.constant 0 : i32
    %c0_i32_0 = arith.constant 0 : i32
    %c0_i32_1 = arith.constant 0 : i32
    return %c0_i32, %c0_i32_0 : i32, i32
  }
  func.func @transform_2(%arg0: i32) -> (i32, i32) {
    %c0_i32 = arith.constant 0 : i32
    %c0_i32_0 = arith.constant 0 : i32
    %c0_i32_1 = arith.constant 0 : i32
    return %c0_i32, %c0_i32_0 : i32, i32
  }
  func.func @transform_3(%arg0: i32) -> (i32, i32) {
    %c0_i32 = arith.constant 0 : i32
    %c0_i32_0 = arith.constant 0 : i32
    return %arg0, %c0_i32 : i32, i32
  }
  func.func @transform_4(%arg0: i32) -> (i32, i32) {
    %c0_i32 = arith.constant 0 : i32
    %c0_i32_0 = arith.constant 0 : i32
    %c0_i32_1 = arith.constant 0 : i32
    return %c0_i32, %c0_i32_0 : i32, i32
  }
  func.func @transform_5(%arg0: i32) -> (i32, i32) {
    %c0_i32 = arith.constant 0 : i32
    %c0_i32_0 = arith.constant 0 : i32
    %c0_i32_1 = arith.constant 0 : i32
    return %c0_i32, %c0_i32_0 : i32, i32
  }
  func.func @transform_6(%arg0: i32) -> (i32, i32) {
    %c0_i32 = arith.constant 0 : i32
    %c0_i32_0 = arith.constant 0 : i32
    return %arg0, %c0_i32 : i32, i32
  }
}

module attributes {stable_mosaic.version = 11 : i64} {
  func.func @_mm_bn_kernel(%arg0: i32, %arg1: memref<16x256xbf16, #tpu.memory_space<vmem>>, %arg2: memref<256x128xbf16, #tpu.memory_space<vmem>>, %arg3: memref<1x128xf32, #tpu.memory_space<vmem>>, %arg4: memref<16x128xbf16, #tpu.memory_space<vmem>>) attributes {dimension_semantics = [#tpu.dimension_semantics<parallel>], iteration_bounds = array<i64: 2>, scalar_prefetch = 0 : i64, scratch_operands = 0 : i64, tpu.core_type = #tpu.core_type<tc>, window_params = [{transform_indices = @transform_0, window_bounds = array<i64: 16, 256>}, {pipeline_mode = #tpu.pipeline_mode<synchronous>, transform_indices = @transform_1, window_bounds = array<i64: 256, 128>}, {pipeline_mode = #tpu.pipeline_mode<synchronous>, transform_indices = @transform_2, window_bounds = array<i64: 1, 128>}, {transform_indices = @transform_3, window_bounds = array<i64: 16, 128>}]} {
    %c0 = arith.constant 0 : index
    %c0_0 = arith.constant 0 : index
    %0 = vector.load %arg1[%c0, %c0_0] : memref<16x256xbf16, #tpu.memory_space<vmem>>, vector<16x256xbf16>
    %c0_1 = arith.constant 0 : index
    %c0_2 = arith.constant 0 : index
    %1 = vector.load %arg2[%c0_1, %c0_2] : memref<256x128xbf16, #tpu.memory_space<vmem>>, vector<256x128xbf16>
    %cst = arith.constant dense<0.000000e+00> : vector<16x128xf32>
    %2 = tpu.matmul %0, %1, %cst {dimension_numbers = #tpu.dot_dimension_numbers<[1], [0], [0], [1], [0, 0, 1, 1], [], []>} : vector<16x256xbf16>, vector<256x128xbf16>, vector<16x128xf32> -> vector<16x128xf32>
    %c0_3 = arith.constant 0 : index
    %c0_4 = arith.constant 0 : index
    %3 = vector.load %arg3[%c0_3, %c0_4] : memref<1x128xf32, #tpu.memory_space<vmem>>, vector<1x128xf32>
    %4 = vector.broadcast %3 : vector<1x128xf32> to vector<16x128xf32>
    %5 = arith.addf %2, %4 : vector<16x128xf32>
    %cst_5 = arith.constant 0.000000e+00 : f32
    %6 = vector.broadcast %cst_5 : f32 to vector<16x128xf32>
    %7 = arith.maximumf %5, %6 : vector<16x128xf32>
    %8 = arith.truncf %7 : vector<16x128xf32> to vector<16x128xbf16>
    %c0_6 = arith.constant 0 : index
    %c0_7 = arith.constant 0 : index
    %9 = vector.load %arg4[%c0_6, %c0_7] : memref<16x128xbf16, #tpu.memory_space<vmem>>, vector<16x128xbf16>
    tpu.vector_store %arg4[%c0_6, %c0_7], %8 {strides = array<i32>} : memref<16x128xbf16, #tpu.memory_space<vmem>>, vector<16x128xbf16>,
    return
  }
  func.func @transform_0(%arg0: i32) -> (i32, i32) {
    %c0_i32 = arith.constant 0 : i32
    %c0_i32_0 = arith.constant 0 : i32
    return %arg0, %c0_i32 : i32, i32
  }
  func.func @transform_1(%arg0: i32) -> (i32, i32) {
    %c0_i32 = arith.constant 0 : i32
    %c0_i32_0 = arith.constant 0 : i32
    %c0_i32_1 = arith.constant 0 : i32
    return %c0_i32, %c0_i32_0 : i32, i32
  }
  func.func @transform_2(%arg0: i32) -> (i32, i32) {
    %c0_i32 = arith.constant 0 : i32
    %c0_i32_0 = arith.constant 0 : i32
    %c0_i32_1 = arith.constant 0 : i32
    return %c0_i32, %c0_i32_0 : i32, i32
  }
  func.func @transform_3(%arg0: i32) -> (i32, i32) {
    %c0_i32 = arith.constant 0 : i32
    %c0_i32_0 = arith.constant 0 : i32
    return %arg0, %c0_i32 : i32, i32
  }
}

module attributes {stable_mosaic.version = 11 : i64} {
  func.func @_mm_bn_shortcut_kernel(%arg0: i32, %arg1: memref<16x384xbf16, #tpu.memory_space<vmem>>, %arg2: memref<384x128xbf16, #tpu.memory_space<vmem>>, %arg3: memref<1x128xf32, #tpu.memory_space<vmem>>, %arg4: memref<16x128xbf16, #tpu.memory_space<vmem>>, %arg5: memref<128x128xbf16, #tpu.memory_space<vmem>>, %arg6: memref<1x128xf32, #tpu.memory_space<vmem>>, %arg7: memref<16x128xbf16, #tpu.memory_space<vmem>>) attributes {dimension_semantics = [#tpu.dimension_semantics<parallel>], iteration_bounds = array<i64: 2>, scalar_prefetch = 0 : i64, scratch_operands = 0 : i64, tpu.core_type = #tpu.core_type<tc>, window_params = [{transform_indices = @transform_0, window_bounds = array<i64: 16, 384>}, {pipeline_mode = #tpu.pipeline_mode<synchronous>, transform_indices = @transform_1, window_bounds = array<i64: 384, 128>}, {pipeline_mode = #tpu.pipeline_mode<synchronous>, transform_indices = @transform_2, window_bounds = array<i64: 1, 128>}, {transform_indices = @transform_3, window_bounds = array<i64: 16, 128>}, {pipeline_mode = #tpu.pipeline_mode<synchronous>, transform_indices = @transform_4, window_bounds = array<i64: 128, 128>}, {pipeline_mode = #tpu.pipeline_mode<synchronous>, transform_indices = @transform_5, window_bounds = array<i64: 1, 128>}, {transform_indices = @transform_6, window_bounds = array<i64: 16, 128>}]} {
    %c0 = arith.constant 0 : index
    %c0_0 = arith.constant 0 : index
    %0 = vector.load %arg1[%c0, %c0_0] : memref<16x384xbf16, #tpu.memory_space<vmem>>, vector<16x384xbf16>
    %c0_1 = arith.constant 0 : index
    %c0_2 = arith.constant 0 : index
    %1 = vector.load %arg2[%c0_1, %c0_2] : memref<384x128xbf16, #tpu.memory_space<vmem>>, vector<384x128xbf16>
    %cst = arith.constant dense<0.000000e+00> : vector<16x128xf32>
    %2 = tpu.matmul %0, %1, %cst {dimension_numbers = #tpu.dot_dimension_numbers<[1], [0], [0], [1], [0, 0, 1, 1], [], []>} : vector<16x384xbf16>, vector<384x128xbf16>, vector<16x128xf32> -> vector<16x128xf32>
    %c0_3 = arith.constant 0 : index
    %c0_4 = arith.constant 0 : index
    %3 = vector.load %arg4[%c0_3, %c0_4] : memref<16x128xbf16, #tpu.memory_space<vmem>>, vector<16x128xbf16>
    %c0_5 = arith.constant 0 : index
    %c0_6 = arith.constant 0 : index
    %4 = vector.load %arg5[%c0_5, %c0_6] : memref<128x128xbf16, #tpu.memory_space<vmem>>, vector<128x128xbf16>
    %cst_7 = arith.constant dense<0.000000e+00> : vector<16x128xf32>
    %5 = tpu.matmul %3, %4, %cst_7 {dimension_numbers = #tpu.dot_dimension_numbers<[1], [0], [0], [1], [0, 0, 1, 1], [], []>} : vector<16x128xbf16>, vector<128x128xbf16>, vector<16x128xf32> -> vector<16x128xf32>
    %c0_8 = arith.constant 0 : index
    %c0_9 = arith.constant 0 : index
    %6 = vector.load %arg3[%c0_8, %c0_9] : memref<1x128xf32, #tpu.memory_space<vmem>>, vector<1x128xf32>
    %7 = vector.broadcast %6 : vector<1x128xf32> to vector<16x128xf32>
    %8 = arith.addf %2, %7 : vector<16x128xf32>
    %9 = arith.addf %8, %5 : vector<16x128xf32>
    %c0_10 = arith.constant 0 : index
    %c0_11 = arith.constant 0 : index
    %10 = vector.load %arg6[%c0_10, %c0_11] : memref<1x128xf32, #tpu.memory_space<vmem>>, vector<1x128xf32>
    %11 = vector.broadcast %10 : vector<1x128xf32> to vector<16x128xf32>
    %12 = arith.addf %9, %11 : vector<16x128xf32>
    %cst_12 = arith.constant 0.000000e+00 : f32
    %13 = vector.broadcast %cst_12 : f32 to vector<16x128xf32>
    %14 = arith.maximumf %12, %13 : vector<16x128xf32>
    %15 = arith.truncf %14 : vector<16x128xf32> to vector<16x128xbf16>
    %c0_13 = arith.constant 0 : index
    %c0_14 = arith.constant 0 : index
    %16 = vector.load %arg7[%c0_13, %c0_14] : memref<16x128xbf16, #tpu.memory_space<vmem>>, vector<16x128xbf16>
    tpu.vector_store %arg7[%c0_13, %c0_14], %15 {strides = array<i32>} : memref<16x128xbf16, #tpu.memory_space<vmem>>, vector<16x128xbf16>,
    return
  }
  func.func @transform_0(%arg0: i32) -> (i32, i32) {
    %c0_i32 = arith.constant 0 : i32
    %c0_i32_0 = arith.constant 0 : i32
    return %arg0, %c0_i32 : i32, i32
  }
  func.func @transform_1(%arg0: i32) -> (i32, i32) {
    %c0_i32 = arith.constant 0 : i32
    %c0_i32_0 = arith.constant 0 : i32
    %c0_i32_1 = arith.constant 0 : i32
    return %c0_i32, %c0_i32_0 : i32, i32
  }
  func.func @transform_2(%arg0: i32) -> (i32, i32) {
    %c0_i32 = arith.constant 0 : i32
    %c0_i32_0 = arith.constant 0 : i32
    %c0_i32_1 = arith.constant 0 : i32
    return %c0_i32, %c0_i32_0 : i32, i32
  }
  func.func @transform_3(%arg0: i32) -> (i32, i32) {
    %c0_i32 = arith.constant 0 : i32
    %c0_i32_0 = arith.constant 0 : i32
    return %arg0, %c0_i32 : i32, i32
  }
  func.func @transform_4(%arg0: i32) -> (i32, i32) {
    %c0_i32 = arith.constant 0 : i32
    %c0_i32_0 = arith.constant 0 : i32
    %c0_i32_1 = arith.constant 0 : i32
    return %c0_i32, %c0_i32_0 : i32, i32
  }
  func.func @transform_5(%arg0: i32) -> (i32, i32) {
    %c0_i32 = arith.constant 0 : i32
    %c0_i32_0 = arith.constant 0 : i32
    %c0_i32_1 = arith.constant 0 : i32
    return %c0_i32, %c0_i32_0 : i32, i32
  }
  func.func @transform_6(%arg0: i32) -> (i32, i32) {
    %c0_i32 = arith.constant 0 : i32
    %c0_i32_0 = arith.constant 0 : i32
    return %arg0, %c0_i32 : i32, i32
  }
}

module attributes {stable_mosaic.version = 11 : i64} {
  func.func @_pool_fc_kernel(%arg0: i32, %arg1: memref<2x16x128xbf16, #tpu.memory_space<vmem>>, %arg2: memref<128x128xbf16, #tpu.memory_space<vmem>>, %arg3: memref<1x128xf32, #tpu.memory_space<vmem>>, %arg4: memref<2x128xf32, #tpu.memory_space<vmem>>) attributes {dimension_semantics = [#tpu.dimension_semantics<arbitrary>], iteration_bounds = array<i64: 1>, scalar_prefetch = 0 : i64, scratch_operands = 0 : i64, tpu.core_type = #tpu.core_type<tc>, window_params = [{pipeline_mode = #tpu.pipeline_mode<synchronous>, transform_indices = @transform_0, window_bounds = array<i64: 2, 16, 128>}, {pipeline_mode = #tpu.pipeline_mode<synchronous>, transform_indices = @transform_1, window_bounds = array<i64: 128, 128>}, {pipeline_mode = #tpu.pipeline_mode<synchronous>, transform_indices = @transform_2, window_bounds = array<i64: 1, 128>}, {pipeline_mode = #tpu.pipeline_mode<synchronous>, transform_indices = @transform_3, window_bounds = array<i64: 2, 128>}]} {
    %c0 = arith.constant 0 : index
    %c0_0 = arith.constant 0 : index
    %c0_1 = arith.constant 0 : index
    %0 = vector.load %arg1[%c0, %c0_0, %c0_1] : memref<2x16x128xbf16, #tpu.memory_space<vmem>>, vector<2x16x128xbf16>
    %1 = arith.extf %0 : vector<2x16x128xbf16> to vector<2x16x128xf32>
    %cst = arith.constant dense<0.000000e+00> : vector<2x128xf32>
    %2 = vector.multi_reduction <add>, %1, %cst [1] : vector<2x16x128xf32> to vector<2x128xf32>
    %cst_2 = arith.constant 6.250000e-02 : f32
    %3 = vector.broadcast %cst_2 : f32 to vector<2x128xf32>
    %4 = arith.mulf %2, %3 : vector<2x128xf32>
    %5 = arith.truncf %4 : vector<2x128xf32> to vector<2x128xbf16>
    %c0_3 = arith.constant 0 : index
    %c0_4 = arith.constant 0 : index
    %6 = vector.load %arg2[%c0_3, %c0_4] : memref<128x128xbf16, #tpu.memory_space<vmem>>, vector<128x128xbf16>
    %cst_5 = arith.constant dense<0.000000e+00> : vector<2x128xf32>
    %7 = tpu.matmul %5, %6, %cst_5 {dimension_numbers = #tpu.dot_dimension_numbers<[1], [0], [0], [1], [0, 0, 1, 1], [], []>} : vector<2x128xbf16>, vector<128x128xbf16>, vector<2x128xf32> -> vector<2x128xf32>
    %c0_6 = arith.constant 0 : index
    %c0_7 = arith.constant 0 : index
    %8 = vector.load %arg3[%c0_6, %c0_7] : memref<1x128xf32, #tpu.memory_space<vmem>>, vector<1x128xf32>
    %9 = vector.broadcast %8 : vector<1x128xf32> to vector<2x128xf32>
    %10 = arith.addf %7, %9 : vector<2x128xf32>
    %c0_8 = arith.constant 0 : index
    %c0_9 = arith.constant 0 : index
    %11 = vector.load %arg4[%c0_8, %c0_9] : memref<2x128xf32, #tpu.memory_space<vmem>>, vector<2x128xf32>
    tpu.vector_store %arg4[%c0_8, %c0_9], %10 {strides = array<i32>} : memref<2x128xf32, #tpu.memory_space<vmem>>, vector<2x128xf32>,
    return
  }
  func.func @transform_0(%arg0: i32) -> (i32, i32, i32) {
    %c0_i32 = arith.constant 0 : i32
    %c0_i32_0 = arith.constant 0 : i32
    %c0_i32_1 = arith.constant 0 : i32
    %c0_i32_2 = arith.constant 0 : i32
    return %c0_i32, %c0_i32_0, %c0_i32_1 : i32, i32, i32
  }
  func.func @transform_1(%arg0: i32) -> (i32, i32) {
    %c0_i32 = arith.constant 0 : i32
    %c0_i32_0 = arith.constant 0 : i32
    %c0_i32_1 = arith.constant 0 : i32
    return %c0_i32, %c0_i32_0 : i32, i32
  }
  func.func @transform_2(%arg0: i32) -> (i32, i32) {
    %c0_i32 = arith.constant 0 : i32
    %c0_i32_0 = arith.constant 0 : i32
    %c0_i32_1 = arith.constant 0 : i32
    return %c0_i32, %c0_i32_0 : i32, i32
  }
  func.func @transform_3(%arg0: i32) -> (i32, i32) {
    %c0_i32 = arith.constant 0 : i32
    %c0_i32_0 = arith.constant 0 : i32
    %c0_i32_1 = arith.constant 0 : i32
    return %c0_i32, %c0_i32_0 : i32, i32
  }
}

</mosaic_0001>

<bundles_post_ra>
// kernel: cifar_resnet_forward.8
= control target key start
LH: loop header
LB: loop body
LE: loop exit
PB: predicated region body
PF: predicated region fallthrough
CT: control target
= control target key end

     0   :  { %s1126_s12 = smov 0   ;;  %s1247_s0 = inlined_call_operand.vmem [shape: bf16[512,128], index: 0, kind: input, shape index: {}]   ;;  %s1248_s1 = inlined_call_operand.vmem [shape: bf16[128,128], index: 1, kind: input, shape index: {}]   ;;  %s1249_s2 = inlined_call_operand.vmem [shape: f32[1,128], index: 2, kind: input, shape index: {}]   ;;  %s1250_s3 = inlined_call_operand.vmem [shape: bf16[512,128], index: 3, kind: output, shape index: {}]  }
   0x1 LB: > { %s783_s13 = sadd.s32 4294967295, %s1104_s12   ;;  %p787_p0 = scmp.ge.s32.totalorder %s1104_s12, 1  ;;  %s1104_s12 = sphi %s1126_s12, %s13_s12  }
   0x2   : > { %p138_p1 = scmp.lt.s32.totalorder %s1104_s12, 3 }
   0x4   : > { %p139_p2 = pnand %p787_p0, %p138_p1 }
   0x5   : > { %s788_s16 = sshll.u32 (!%p139_p2), %s783_s13, 5 }
   0x6   : > { %142 = sbr.rel (%p139_p2) target bundleno = 274 (0x112), region = 32  ;;  %p163_p3 = scmp.lt.s32.totalorder (!%p139_p2), %s788_s16, 63 }
   0xb   : > { %v1074_v0 = vld [vmem:[%s1248_s1 + $0x38] sm:$0xff]   ;;  %v1075_v1 = vld [vmem:[%s1248_s1 + $0x30] sm:$0xff]   ;;  %s1252_s16 = smov (!%p163_p3, %s788_s16), 63  ;;  %v1076_v2 = vld [vmem:[%s1248_s1 + $0x28] sm:$0xff]  }
   0xc   : > { %1002 = vmatprep.subr.bf16.mxu0 %v1074_v0  ;;  %1050 = vmatprep.subr.bf16.mxu1 %v1074_v0  ;;  %s789_s21 = sshll.u32 %s1252_s16, 2  ;;  %v1077_v3 = vld [vmem:[%s1248_s1 + $0x20] sm:$0xff]   ;;  %v1078_v6 = vld [vmem:[%s1248_s1 + $0x18] sm:$0xff]   ;;  %v1079_v7 = vld [vmem:[%s1248_s1 + $0x10] sm:$0xff]  }
   0xd   : > { %1003 = vmatpush3.bf16.msra.mxu0 %v1074_v0  ;;  %1058 = vmatpush3.bf16.msra.mxu1 %v1074_v0  ;;  %s1151_s24 = scalar_lea.vmem %s1247_s0, %s789_s21  ;;  %v1080_v8 = vld [vmem:[%s1248_s1 + $0x8] sm:$0xff]   ;;  %v1081_v9 = vld [vmem:[%s1248_s1] sm:$0xff]   ;;  %s1202_s13 = scalar_lea.vmem %s1250_s3, %s789_s21 }
   0xe   : > { %1004 = vmatprep.subr.bf16.mxu0 %v1075_v1  ;;  %1051 = vmatprep.subr.bf16.mxu1 %v1075_v1  ;;  %v1082_v4 = vld [vmem:[%s1151_s24] sm:$0xff]   ;;  %v1084_v10 = vld [vmem:[%s1151_s24 + $0x8] sm:$0xff]   ;;  %v1086_v12 = vld [vmem:[%s1151_s24 + $0x10] sm:$0xff]  }
   0xf   : > { %v1083_v5 = vld [vmem:[%s1151_s24 + $0x40] sm:$0xff]   ;;  %1018 = vmatprep.mubr.bf16.mxu0 %v1082_v4  ;;  %v1085_v11 = vld [vmem:[%s1151_s24 + $0x48] sm:$0xff]   ;;  %v1087_v13 = vld [vmem:[%s1151_s24 + $0x50] sm:$0xff]  }
  0x10   : > { %1034 = vmatprep.mubr.bf16.mxu1 %v1083_v5  ;;  %v1088_v14 = vld [vmem:[%s1151_s24 + $0x18] sm:$0xff]   ;;  %v1090_v16 = vld [vmem:[%s1151_s24 + $0x20] sm:$0xff]   ;;  %v1092_v18 = vld [vmem:[%s1151_s24 + $0x28] sm:$0xff]  }
  0x11   : > { %1005 = vmatpush3.bf16.msra.mxu0 %v1075_v1  ;;  %1059 = vmatpush3.bf16.msra.mxu1 %v1075_v1  ;;  %v1089_v15 = vld [vmem:[%s1151_s24 + $0x58] sm:$0xff]   ;;  %v1091_v17 = vld [vmem:[%s1151_s24 + $0x60] sm:$0xff]   ;;  %v1093_v19 = vld [vmem:[%s1151_s24 + $0x68] sm:$0xff]  }
  0x12   : > { %1006 = vmatprep.subr.bf16.mxu0 %v1076_v2  ;;  %1052 = vmatprep.subr.bf16.mxu1 %v1076_v2  ;;  %v1094_v20 = vld [vmem:[%s1151_s24 + $0x30] sm:$0xff]   ;;  %v1096_v22 = vld [vmem:[%s1151_s24 + $0x38] sm:$0xff]   ;;  %v1187_v24 = vld [vmem:[%s1249_s2] ss:$0 sm:$0xff] }
  0x13   : > { %v1095_v21 = vld [vmem:[%s1151_s24 + $0x70] sm:$0xff]   ;;  %v1097_v23 = vld [vmem:[%s1151_s24 + $0x78] sm:$0xff]  }
  0x15   : > { %1007 = vmatpush3.bf16.msra.mxu0 %v1076_v2  ;;  %1060 = vmatpush3.bf16.msra.mxu1 %v1076_v2 }
  0x16   : > { %1008 = vmatprep.subr.bf16.mxu0 %v1077_v3  ;;  %1053 = vmatprep.subr.bf16.mxu1 %v1077_v3 }
  0x19   : > { %1009 = vmatpush3.bf16.msra.mxu0 %v1077_v3  ;;  %1061 = vmatpush3.bf16.msra.mxu1 %v1077_v3 }
  0x1a   : > { %1010 = vmatprep.subr.bf16.mxu0 %v1078_v6  ;;  %1054 = vmatprep.subr.bf16.mxu1 %v1078_v6 }
  0x1d   : > { %1011 = vmatpush3.bf16.msra.mxu0 %v1078_v6  ;;  %1062 = vmatpush3.bf16.msra.mxu1 %v1078_v6 }
  0x1e   : > { %1012 = vmatprep.subr.bf16.mxu0 %v1079_v7  ;;  %1055 = vmatprep.subr.bf16.mxu1 %v1079_v7 }
  0x21   : > { %1013 = vmatpush3.bf16.msra.mxu0 %v1079_v7  ;;  %1063 = vmatpush3.bf16.msra.mxu1 %v1079_v7 }
  0x22   : > { %1014 = vmatprep.subr.bf16.mxu0 %v1080_v8  ;;  %1056 = vmatprep.subr.bf16.mxu1 %v1080_v8 }
  0x25   : > { %1015 = vmatpush3.bf16.msra.mxu0 %v1080_v8  ;;  %1064 = vmatpush3.bf16.msra.mxu1 %v1080_v8 }
  0x26   : > { %1016 = vmatprep.subr.bf16.mxu0 %v1081_v9  ;;  %1057 = vmatprep.subr.bf16.mxu1 %v1081_v9 }
  0x29   : > { %1017 = vmatpush3.bf16.msra.mxu0 %v1081_v9  ;;  %1065 = vmatpush3.bf16.msra.mxu1 %v1081_v9 }
  0x2c   : > { %1019 = vmatmul.mubr.bf16.vlgmr.msra.gmra.mxu0 %v1084_v10  ;;  %1035 = vmatmul.mubr.bf16.vlgmr.msra.gmra.mxu1 %v1085_v11 }
  0x2d   : > { %1022 = vmatprep.mubr.bf16.mxu0 %v1086_v12  ;;  %1038 = vmatprep.mubr.bf16.mxu1 %v1087_v13 }
  0x34   : > { %1023 = vmatmul.mubr.bf16.gmra.mxu0 %v1088_v14  ;;  %1039 = vmatmul.mubr.bf16.gmra.mxu1 %v1089_v15 }
  0x35   : > { %1026 = vmatprep.mubr.bf16.mxu0 %v1090_v16  ;;  %1042 = vmatprep.mubr.bf16.mxu1 %v1091_v17 }
  0x3c   : > { %1027 = vmatmul.mubr.bf16.gmra.mxu0 %v1092_v18  ;;  %1043 = vmatmul.mubr.bf16.gmra.mxu1 %v1093_v19 }
  0x3d   : > { %1030 = vmatprep.mubr.bf16.mxu0 %v1094_v20  ;;  %1046 = vmatprep.mubr.bf16.mxu1 %v1095_v21 }
  0x44   : > { %1031 = vmatmul.mubr.bf16.gmra.mxu0 %v1096_v22  ;;  %1047 = vmatmul.mubr.bf16.gmra.mxu1 %v1097_v23 }
  0xec   : > { %v1020_v25 = vpop.f32.mrf.mxu0  ;;  %v1036_v26 = vpop.f32.mrf.mxu1 }
  0xed   : > { %v417_v27 = vadd.f32 %v1020_v25, %v1187_v24  ;;  %v481_v28 = vadd.f32 %v1036_v26, %v1187_v24 }
  0xee   : > { %v408_v29 = vpop.f32.mrf.mxu0  ;;  %v472_v30 = vpop.f32.mrf.mxu1 }
  0xef   : > { %v409_v31 = vadd.f32 %v1187_v24, %v408_v29  ;;  %v473_v32 = vadd.f32 %v1187_v24, %v472_v30  ;;  %v537_v37 = vmax.f32 %v417_v27, 0.0  ;;  %v553_v38 = vmax.f32 %v481_v28, 0.0 }
  0xf0   : > { %v1021_v33 = vpop.f32.mrf.mxu0  ;;  %v1037_v34 = vpop.f32.mrf.mxu1 }
  0xf1   : > { %v420_v35 = vadd.f32 %v1021_v33, %v1187_v24  ;;  %v484_v36 = vadd.f32 %v1037_v34, %v1187_v24  ;;  %v535_v45 = vmax.f32 %v409_v31, 0.0  ;;  %v551_v46 = vmax.f32 %v473_v32, 0.0 }
  0xf2   : > { %v411_v39 = vpop.f32.mrf.mxu0  ;;  %v475_v40 = vpop.f32.mrf.mxu1 }
  0xf3   : > { %v538_v41 = vmax.f32 %v420_v35, 0.0  ;;  %v554_v42 = vmax.f32 %v484_v36, 0.0  ;;  %v412_v43 = vadd.f32 %v1187_v24, %v411_v39  ;;  %v476_v44 = vadd.f32 %v1187_v24, %v475_v40 }
  0xf4   : > { %v1024_v47 = vpop.f32.mrf.mxu0  ;;  %v1040_v48 = vpop.f32.mrf.mxu1 }
  0xf5   : > { %v891_v49 = vpack.c.bf16 %v538_v41, %v537_v37  ;;  %v931_v50 = vpack.c.bf16 %v554_v42, %v553_v38  ;;  %v536_v51 = vmax.f32 %v412_v43, 0.0  ;;  %v552_v52 = vmax.f32 %v476_v44, 0.0 }
  0xf6   : > { %v433_v53 = vadd.f32 %v1024_v47, %v1187_v24  ;;  %v497_v54 = vadd.f32 %v1040_v48, %v1187_v24  ;;  %v424_v55 = vpop.f32.mrf.mxu0  ;;  %v488_v56 = vpop.f32.mrf.mxu1 }
  0xf7   : > { %963 = vst [vmem:[%s1202_s13 + $0x8] sm:$0xff] %v891_v49   ;;  %971 = vst [vmem:[%s1202_s13 + $0x48] sm:$0xff] %v931_v50   ;;  %v886_v57 = vpack.c.bf16 %v536_v51, %v535_v45  ;;  %v926_v58 = vpack.c.bf16 %v552_v52, %v551_v46  ;;  %v425_v59 = vadd.f32 %v1187_v24, %v424_v55 }
  0xf8   : > { %v489_v60 = vadd.f32 %v1187_v24, %v488_v56  ;;  %v1025_v61 = vpop.f32.mrf.mxu0  ;;  %v1041_v62 = vpop.f32.mrf.mxu1  ;;  %v541_v1 = vmax.f32 %v433_v53, 0.0  ;;  %v557_v2 = vmax.f32 %v497_v54, 0.0 }
  0xf9   : > { %887 = vst [vmem:[%s1202_s13] sm:$0xff] %v886_v57   ;;  %970 = vst [vmem:[%s1202_s13 + $0x40] sm:$0xff] %v926_v58   ;;  %v436_v63 = vadd.f32 %v1025_v61, %v1187_v24  ;;  %v500_v0 = vadd.f32 %v1041_v62, %v1187_v24  ;;  %v539_v9 = vmax.f32 %v425_v59, 0.0 }
  0xfa   : > { %v427_v3 = vpop.f32.mrf.mxu0  ;;  %v491_v4 = vpop.f32.mrf.mxu1  ;;  %v555_v10 = vmax.f32 %v489_v60, 0.0 }
  0xfb   : > { %v542_v5 = vmax.f32 %v436_v63, 0.0  ;;  %v558_v6 = vmax.f32 %v500_v0, 0.0  ;;  %v428_v7 = vadd.f32 %v1187_v24, %v427_v3  ;;  %v492_v8 = vadd.f32 %v1187_v24, %v491_v4 }
  0xfc   : > { %v1028_v11 = vpop.f32.mrf.mxu0  ;;  %v1044_v12 = vpop.f32.mrf.mxu1 }
  0xfd   : > { %v901_v13 = vpack.c.bf16 %v542_v5, %v541_v1  ;;  %v941_v14 = vpack.c.bf16 %v558_v6, %v557_v2  ;;  %v540_v15 = vmax.f32 %v428_v7, 0.0  ;;  %v556_v16 = vmax.f32 %v492_v8, 0.0 }
  0xfe   : > { %v449_v17 = vadd.f32 %v1028_v11, %v1187_v24  ;;  %v513_v18 = vadd.f32 %v1044_v12, %v1187_v24  ;;  %v440_v19 = vpop.f32.mrf.mxu0  ;;  %v504_v20 = vpop.f32.mrf.mxu1 }
  0xff   : > { %965 = vst [vmem:[%s1202_s13 + $0x18] sm:$0xff] %v901_v13   ;;  %973 = vst [vmem:[%s1202_s13 + $0x58] sm:$0xff] %v941_v14   ;;  %v896_v21 = vpack.c.bf16 %v540_v15, %v539_v9  ;;  %v936_v22 = vpack.c.bf16 %v556_v16, %v555_v10  ;;  %v441_v23 = vadd.f32 %v1187_v24, %v440_v19 }
 0x100   : > { %v505_v25 = vadd.f32 %v1187_v24, %v504_v20  ;;  %v1029_v26 = vpop.f32.mrf.mxu0  ;;  %v1045_v27 = vpop.f32.mrf.mxu1  ;;  %v545_v30 = vmax.f32 %v449_v17, 0.0  ;;  %v561_v31 = vmax.f32 %v513_v18, 0.0 }
 0x101   : > { %964 = vst [vmem:[%s1202_s13 + $0x10] sm:$0xff] %v896_v21   ;;  %972 = vst [vmem:[%s1202_s13 + $0x50] sm:$0xff] %v936_v22   ;;  %v452_v28 = vadd.f32 %v1029_v26, %v1187_v24  ;;  %v516_v29 = vadd.f32 %v1045_v27, %v1187_v24  ;;  %v543_v38 = vmax.f32 %v441_v23, 0.0 }
 0x102   : > { %v443_v32 = vpop.f32.mrf.mxu0  ;;  %v507_v33 = vpop.f32.mrf.mxu1  ;;  %v559_v39 = vmax.f32 %v505_v25, 0.0 }
 0x103   : > { %v546_v34 = vmax.f32 %v452_v28, 0.0  ;;  %v562_v35 = vmax.f32 %v516_v29, 0.0  ;;  %v444_v36 = vadd.f32 %v1187_v24, %v443_v32  ;;  %v508_v37 = vadd.f32 %v1187_v24, %v507_v33 }
 0x104   : > { %v1032_v40 = vpop.f32.mrf.mxu0  ;;  %v1048_v41 = vpop.f32.mrf.mxu1 }
 0x105   : > { %v911_v42 = vpack.c.bf16 %v546_v34, %v545_v30  ;;  %v951_v43 = vpack.c.bf16 %v562_v35, %v561_v31  ;;  %v544_v44 = vmax.f32 %v444_v36, 0.0  ;;  %v560_v45 = vmax.f32 %v508_v37, 0.0 }
 0x106   : > { %v465_v46 = vadd.f32 %v1032_v40, %v1187_v24  ;;  %v529_v47 = vadd.f32 %v1048_v41, %v1187_v24  ;;  %v456_v48 = vpop.f32.mrf.mxu0  ;;  %v520_v49 = vpop.f32.mrf.mxu1 }
 0x107   : > { %967 = vst [vmem:[%s1202_s13 + $0x28] sm:$0xff] %v911_v42   ;;  %975 = vst [vmem:[%s1202_s13 + $0x68] sm:$0xff] %v951_v43   ;;  %v906_v50 = vpack.c.bf16 %v544_v44, %v543_v38  ;;  %v946_v51 = vpack.c.bf16 %v560_v45, %v559_v39  ;;  %v457_v52 = vadd.f32 %v1187_v24, %v456_v48 }
 0x108   : > { %v521_v53 = vadd.f32 %v1187_v24, %v520_v49  ;;  %v1033_v54 = vpop.f32.mrf.mxu0  ;;  %v1049_v55 = vpop.f32.mrf.mxu1  ;;  %v549_v58 = vmax.f32 %v465_v46, 0.0  ;;  %v565_v59 = vmax.f32 %v529_v47, 0.0 }
 0x109   : > { %966 = vst [vmem:[%s1202_s13 + $0x20] sm:$0xff] %v906_v50   ;;  %974 = vst [vmem:[%s1202_s13 + $0x60] sm:$0xff] %v946_v51   ;;  %v468_v56 = vadd.f32 %v1033_v54, %v1187_v24  ;;  %v532_v57 = vadd.f32 %v1049_v55, %v1187_v24  ;;  %v547_v2 = vmax.f32 %v457_v52, 0.0 }
 0x10a   : > { %v459_v60 = vpop.f32.mrf.mxu0  ;;  %v523_v61 = vpop.f32.mrf.mxu1  ;;  %v563_v3 = vmax.f32 %v521_v53, 0.0 }
 0x10b   : > { %v550_v62 = vmax.f32 %v468_v56, 0.0  ;;  %v566_v63 = vmax.f32 %v532_v57, 0.0  ;;  %v460_v0 = vadd.f32 %v1187_v24, %v459_v60  ;;  %v524_v1 = vadd.f32 %v1187_v24, %v523_v61 }
 0x10d   : > { %v921_v4 = vpack.c.bf16 %v550_v62, %v549_v58  ;;  %v961_v5 = vpack.c.bf16 %v566_v63, %v565_v59  ;;  %v548_v6 = vmax.f32 %v460_v0, 0.0  ;;  %v564_v7 = vmax.f32 %v524_v1, 0.0 }
 0x10f   : > { %969 = vst [vmem:[%s1202_s13 + $0x38] sm:$0xff] %v921_v4   ;;  %977 = vst [vmem:[%s1202_s13 + $0x78] sm:$0xff] %v961_v5   ;;  %v916_v8 = vpack.c.bf16 %v548_v6, %v547_v2  ;;  %v956_v9 = vpack.c.bf16 %v564_v7, %v563_v3 }
 0x111   : > { %968 = vst [vmem:[%s1202_s13 + $0x30] sm:$0xff] %v916_v8   ;;  %976 = vst [vmem:[%s1202_s13 + $0x70] sm:$0xff] %v956_v9  }
 0x112 PF: > { %s13_s12 = sadd.s32 1, %s1104_s12  }
 0x113   : > { %p10_p4 = scmp.ge.s32.totalorder %s13_s12, 4  }
 0x115   :  { %12 = sbr.rel (!%p10_p4) target bundleno = 1 (0x1), region = 62 }

// kernel: cifar_resnet_forward.10
= control target key start
LH: loop header
LB: loop body
LE: loop exit
PB: predicated region body
PF: predicated region fallthrough
CT: control target
= control target key end

     0   :  { %s1369_s15 = smov 0   ;;  %s1593_s0 = inlined_call_operand.vmem [shape: bf16[512,128], index: 0, kind: input, shape index: {}]   ;;  %s1594_s1 = inlined_call_operand.vmem [shape: bf16[128,128], index: 1, kind: input, shape index: {}]   ;;  %s1595_s2 = inlined_call_operand.vmem [shape: f32[1,128], index: 2, kind: input, shape index: {}]   ;;  %s1596_s3 = inlined_call_operand.vmem [shape: bf16[512,128], index: 3, kind: input, shape index: {}]   ;;  %s1597_s4 = inlined_call_operand.vmem [shape: bf16[512,128], index: 4, kind: output, shape index: {}]  }
   0x1 LB: > { %s940_s16 = sadd.s32 4294967295, %s1342_s15   ;;  %p944_p0 = scmp.ge.s32.totalorder %s1342_s15, 1  ;;  %s1342_s15 = sphi %s1369_s15, %s14_s15  }
   0x2   : > { %p174_p1 = scmp.lt.s32.totalorder %s1342_s15, 3 }
   0x4   : > { %p175_p2 = pnand %p944_p0, %p174_p1 }
   0x5   : > { %s945_s19 = sshll.u32 (!%p175_p2), %s940_s16, 5 }
   0x6   : > { %178 = sbr.rel (%p175_p2) target bundleno = 276 (0x114), region = 36  ;;  %p206_p3 = scmp.lt.s32.totalorder (!%p175_p2), %s945_s19, 63 }
   0xb   : > { %v1312_v0 = vld [vmem:[%s1594_s1 + $0x38] sm:$0xff]   ;;  %v1313_v1 = vld [vmem:[%s1594_s1 + $0x30] sm:$0xff]   ;;  %s1599_s19 = smov (!%p206_p3, %s945_s19), 63  ;;  %v1314_v2 = vld [vmem:[%s1594_s1 + $0x28] sm:$0xff]  }
   0xc   : > { %1240 = vmatprep.subr.bf16.mxu0 %v1312_v0  ;;  %1288 = vmatprep.subr.bf16.mxu1 %v1312_v0  ;;  %s1386_s24 = sshll.u32 %s1599_s19, 2  ;;  %v1315_v3 = vld [vmem:[%s1594_s1 + $0x20] sm:$0xff]   ;;  %v1316_v6 = vld [vmem:[%s1594_s1 + $0x18] sm:$0xff]   ;;  %v1317_v7 = vld [vmem:[%s1594_s1 + $0x10] sm:$0xff]  }
   0xd   : > { %1241 = vmatpush3.bf16.msra.mxu0 %v1312_v0  ;;  %1296 = vmatpush3.bf16.msra.mxu1 %v1312_v0  ;;  %s1392_s27 = scalar_lea.vmem %s1593_s0, %s1386_s24  ;;  %v1318_v8 = vld [vmem:[%s1594_s1 + $0x8] sm:$0xff]   ;;  %v1319_v9 = vld [vmem:[%s1594_s1] sm:$0xff]   ;;  %s1429_s14 = scalar_lea.vmem %s1596_s3, %s1386_s24 }
   0xe   : > { %1242 = vmatprep.subr.bf16.mxu0 %v1313_v1  ;;  %1289 = vmatprep.subr.bf16.mxu1 %v1313_v1  ;;  %v1320_v4 = vld [vmem:[%s1392_s27] sm:$0xff]   ;;  %v1322_v10 = vld [vmem:[%s1392_s27 + $0x8] sm:$0xff]   ;;  %v1324_v12 = vld [vmem:[%s1392_s27 + $0x10] sm:$0xff]   ;;  %s1492_s20 = scalar_lea.vmem %s1597_s4, %s1386_s24 }
   0xf   : > { %v1321_v5 = vld [vmem:[%s1392_s27 + $0x40] sm:$0xff]   ;;  %1256 = vmatprep.mubr.bf16.mxu0 %v1320_v4  ;;  %v1323_v11 = vld [vmem:[%s1392_s27 + $0x48] sm:$0xff]   ;;  %v1325_v13 = vld [vmem:[%s1392_s27 + $0x50] sm:$0xff]  }
  0x10   : > { %1272 = vmatprep.mubr.bf16.mxu1 %v1321_v5  ;;  %v1326_v14 = vld [vmem:[%s1392_s27 + $0x18] sm:$0xff]   ;;  %v1328_v16 = vld [vmem:[%s1392_s27 + $0x20] sm:$0xff]   ;;  %v1330_v18 = vld [vmem:[%s1392_s27 + $0x28] sm:$0xff]  }
  0x11   : > { %1243 = vmatpush3.bf16.msra.mxu0 %v1313_v1  ;;  %1297 = vmatpush3.bf16.msra.mxu1 %v1313_v1  ;;  %v1327_v15 = vld [vmem:[%s1392_s27 + $0x58] sm:$0xff]   ;;  %v1329_v17 = vld [vmem:[%s1392_s27 + $0x60] sm:$0xff]   ;;  %v1331_v19 = vld [vmem:[%s1392_s27 + $0x68] sm:$0xff]  }
  0x12   : > { %1244 = vmatprep.subr.bf16.mxu0 %v1314_v2  ;;  %1290 = vmatprep.subr.bf16.mxu1 %v1314_v2  ;;  %v1332_v20 = vld [vmem:[%s1392_s27 + $0x30] sm:$0xff]   ;;  %v1334_v22 = vld [vmem:[%s1392_s27 + $0x38] sm:$0xff]   ;;  %v1186_v24 = vld [vmem:[%s1429_s14 + $0x8] sm:$0xff]  }
  0x13   : > { %v1333_v21 = vld [vmem:[%s1392_s27 + $0x70] sm:$0xff]   ;;  %v1335_v23 = vld [vmem:[%s1392_s27 + $0x78] sm:$0xff]   ;;  %v1194_v25 = vld [vmem:[%s1429_s14 + $0x48] sm:$0xff]   ;;  %v1048_v32 = vunpack.c.l.bf16 %v1186_v24  ;;  %v1049_v41 = vunpack.c.h.bf16 %v1186_v24 }
  0x14   : > { %v1043_v26 = vld [vmem:[%s1429_s14] sm:$0xff]   ;;  %v1441_v29 = vld [vmem:[%s1429_s14 + $0x18] sm:$0xff]   ;;  %v1080_v34 = vunpack.c.l.bf16 %v1194_v25  ;;  %v1447_v37 = vld [vmem:[%s1429_s14 + $0x10] sm:$0xff]   ;;  %v1081_v42 = vunpack.c.h.bf16 %v1194_v25 }
  0x15   : > { %1245 = vmatpush3.bf16.msra.mxu0 %v1314_v2  ;;  %1298 = vmatpush3.bf16.msra.mxu1 %v1314_v2  ;;  %v1193_v27 = vld [vmem:[%s1429_s14 + $0x40] sm:$0xff]   ;;  %v1444_v30 = vld [vmem:[%s1429_s14 + $0x58] sm:$0xff]   ;;  %v1044_v35 = vunpack.c.l.bf16 %v1043_v26  ;;  %v1450_v38 = vld [vmem:[%s1429_s14 + $0x50] sm:$0xff]   ;;  %v1045_v45 = vunpack.c.h.bf16 %v1043_v26  ;;  %v1056_v47 = vunpack.c.l.bf16 %v1441_v29  ;;  %v1052_v53 = vunpack.c.l.bf16 %v1447_v37 }
  0x16   : > { %1246 = vmatprep.subr.bf16.mxu0 %v1315_v3  ;;  %1291 = vmatprep.subr.bf16.mxu1 %v1315_v3  ;;  %v1438_v28 = vld [vmem:[%s1595_s2] ss:$0 sm:$0xff]  ;;  %v1076_v36 = vunpack.c.l.bf16 %v1193_v27  ;;  %v1077_v46 = vunpack.c.h.bf16 %v1193_v27  ;;  %v1088_v48 = vunpack.c.l.bf16 %v1444_v30  ;;  %v1457_v49 = vld [vmem:[%s1429_s14 + $0x28] sm:$0xff]   ;;  %v1084_v54 = vunpack.c.l.bf16 %v1450_v38 }
  0x17   : > { %v1460_v50 = vld [vmem:[%s1429_s14 + $0x68] sm:$0xff]   ;;  %v1467_v55 = vld [vmem:[%s1429_s14 + $0x20] sm:$0xff]   ;;  %v1057_v59 = vunpack.c.h.bf16 %v1441_v29  ;;  %v1089_v60 = vunpack.c.h.bf16 %v1444_v30  ;;  %v1053_v61 = vunpack.c.h.bf16 %v1447_v37  ;;  %v1085_v62 = vunpack.c.h.bf16 %v1450_v38  ;;  %v1536_v38 = vld [vmem:[%s1429_s14 + $0x70] sm:$0xff]  }
  0x18   : > { %v1470_v56 = vld [vmem:[%s1429_s14 + $0x60] sm:$0xff]   ;;  %v1064_v1 = vunpack.c.l.bf16 %v1457_v49  ;;  %v1096_v2 = vunpack.c.l.bf16 %v1460_v50 }
  0x19   : > { %1247 = vmatpush3.bf16.msra.mxu0 %v1315_v3  ;;  %1299 = vmatpush3.bf16.msra.mxu1 %v1315_v3 }
  0x1a   : > { %1248 = vmatprep.subr.bf16.mxu0 %v1316_v6  ;;  %1292 = vmatprep.subr.bf16.mxu1 %v1316_v6 }
  0x1d   : > { %1249 = vmatpush3.bf16.msra.mxu0 %v1316_v6  ;;  %1300 = vmatpush3.bf16.msra.mxu1 %v1316_v6 }
  0x1e   : > { %1250 = vmatprep.subr.bf16.mxu0 %v1317_v7  ;;  %1293 = vmatprep.subr.bf16.mxu1 %v1317_v7 }
  0x21   : > { %1251 = vmatpush3.bf16.msra.mxu0 %v1317_v7  ;;  %1301 = vmatpush3.bf16.msra.mxu1 %v1317_v7  ;;  %v1060_v7 = vunpack.c.l.bf16 %v1467_v55 }
  0x22   : > { %1252 = vmatprep.subr.bf16.mxu0 %v1318_v8  ;;  %1294 = vmatprep.subr.bf16.mxu1 %v1318_v8 }
  0x25   : > { %1253 = vmatpush3.bf16.msra.mxu0 %v1318_v8  ;;  %1302 = vmatpush3.bf16.msra.mxu1 %v1318_v8  ;;  %v1092_v8 = vunpack.c.l.bf16 %v1470_v56 }
  0x26   : > { %1254 = vmatprep.subr.bf16.mxu0 %v1319_v9  ;;  %1295 = vmatprep.subr.bf16.mxu1 %v1319_v9 }
  0x29   : > { %1255 = vmatpush3.bf16.msra.mxu0 %v1319_v9  ;;  %1303 = vmatpush3.bf16.msra.mxu1 %v1319_v9 }
  0x2c   : > { %1257 = vmatmul.mubr.bf16.vlgmr.msra.gmra.mxu0 %v1322_v10  ;;  %1273 = vmatmul.mubr.bf16.vlgmr.msra.gmra.mxu1 %v1323_v11 }
  0x2d   : > { %1260 = vmatprep.mubr.bf16.mxu0 %v1324_v12  ;;  %1276 = vmatprep.mubr.bf16.mxu1 %v1325_v13 }
  0x34   : > { %1261 = vmatmul.mubr.bf16.gmra.mxu0 %v1326_v14  ;;  %1277 = vmatmul.mubr.bf16.gmra.mxu1 %v1327_v15 }
  0x35   : > { %1264 = vmatprep.mubr.bf16.mxu0 %v1328_v16  ;;  %1280 = vmatprep.mubr.bf16.mxu1 %v1329_v17  ;;  %v1065_v17 = vunpack.c.h.bf16 %v1457_v49 }
  0x3c   : > { %1265 = vmatmul.mubr.bf16.gmra.mxu0 %v1330_v18  ;;  %1281 = vmatmul.mubr.bf16.gmra.mxu1 %v1331_v19  ;;  %v1097_v18 = vunpack.c.h.bf16 %v1460_v50 }
  0x3d   : > { %1268 = vmatprep.mubr.bf16.mxu0 %v1332_v20  ;;  %1284 = vmatprep.mubr.bf16.mxu1 %v1333_v21 }
  0x44   : > { %1269 = vmatmul.mubr.bf16.gmra.mxu0 %v1334_v22  ;;  %1285 = vmatmul.mubr.bf16.gmra.mxu1 %v1335_v23 }
  0xec   : > { %v1258_v31 = vpop.f32.mrf.mxu0  ;;  %v1274_v33 = vpop.f32.mrf.mxu1 }
  0xed   : > { %v466_v39 = vadd.f32 %v1258_v31, %v1438_v28  ;;  %v530_v40 = vadd.f32 %v1274_v33, %v1438_v28 }
  0xee   : > { %v457_v43 = vpop.f32.mrf.mxu0  ;;  %v521_v44 = vpop.f32.mrf.mxu1 }
  0xef   : > { %v458_v51 = vadd.f32 %v1438_v28, %v457_v43  ;;  %v522_v52 = vadd.f32 %v1438_v28, %v521_v44  ;;  %v650_v63 = vadd.f32 %v1048_v32, %v466_v39  ;;  %v666_v0 = vadd.f32 %v1080_v34, %v530_v40 }
  0xf0   : > { %v1259_v57 = vpop.f32.mrf.mxu0  ;;  %v1275_v58 = vpop.f32.mrf.mxu1 }
  0xf1   : > { %v469_v3 = vadd.f32 %v1259_v57, %v1438_v28  ;;  %v533_v4 = vadd.f32 %v1275_v58, %v1438_v28  ;;  %v648_v9 = vadd.f32 %v1044_v35, %v458_v51  ;;  %v664_v10 = vadd.f32 %v1076_v36, %v522_v52  ;;  %v1499_v52 = vld [vmem:[%s1429_s14 + $0x38] sm:$0xff]  }
  0xf2   : > { %v460_v5 = vpop.f32.mrf.mxu0  ;;  %v524_v6 = vpop.f32.mrf.mxu1  ;;  %v682_v19 = vmax.f32 %v650_v63, 0.0  ;;  %v698_v20 = vmax.f32 %v666_v0, 0.0  ;;  %v1093_v51 = vunpack.c.h.bf16 %v1470_v56  ;;  %v1502_v57 = vld [vmem:[%s1429_s14 + $0x78] sm:$0xff]  }
  0xf3   : > { %v461_v11 = vadd.f32 %v1438_v28, %v460_v5  ;;  %v525_v12 = vadd.f32 %v1438_v28, %v524_v6  ;;  %v651_v13 = vadd.f32 %v1049_v41, %v469_v3  ;;  %v667_v14 = vadd.f32 %v1081_v42, %v533_v4 }
  0xf4   : > { %v1262_v15 = vpop.f32.mrf.mxu0  ;;  %v1278_v16 = vpop.f32.mrf.mxu1  ;;  %v680_v32 = vmax.f32 %v648_v9, 0.0  ;;  %v696_v33 = vmax.f32 %v664_v10, 0.0 }
  0xf5   : > { %v649_v21 = vadd.f32 %v1045_v45, %v461_v11  ;;  %v665_v22 = vadd.f32 %v1077_v46, %v525_v12  ;;  %v683_v23 = vmax.f32 %v651_v13, 0.0  ;;  %v699_v24 = vmax.f32 %v667_v14, 0.0 }
  0xf6   : > { %v482_v25 = vadd.f32 %v1262_v15, %v1438_v28  ;;  %v546_v26 = vadd.f32 %v1278_v16, %v1438_v28  ;;  %v473_v27 = vpop.f32.mrf.mxu0  ;;  %v537_v31 = vpop.f32.mrf.mxu1  ;;  %v1061_v46 = vunpack.c.h.bf16 %v1467_v55  ;;  %v1072_v14 = vunpack.c.l.bf16 %v1499_v52 }
  0xf7   : > { %v681_v34 = vmax.f32 %v649_v21, 0.0  ;;  %v697_v35 = vmax.f32 %v665_v22, 0.0  ;;  %v1114_v36 = vpack.c.bf16 %v683_v23, %v682_v19  ;;  %v1154_v39 = vpack.c.bf16 %v699_v24, %v698_v20 }
  0xf8   : > { %v474_v40 = vadd.f32 %v1438_v28, %v473_v27  ;;  %v538_v41 = vadd.f32 %v1438_v28, %v537_v31  ;;  %v1263_v42 = vpop.f32.mrf.mxu0  ;;  %v1279_v43 = vpop.f32.mrf.mxu1  ;;  %v654_v58 = vadd.f32 %v1056_v47, %v482_v25  ;;  %v670_v63 = vadd.f32 %v1088_v48, %v546_v26 }
  0xf9   : > { %v1109_v44 = vpack.c.bf16 %v681_v34, %v680_v32  ;;  %v1149_v45 = vpack.c.bf16 %v697_v35, %v696_v33  ;;  %1201 = vst [vmem:[%s1492_s20 + $0x8] sm:$0xff] %v1114_v36   ;;  %1209 = vst [vmem:[%s1492_s20 + $0x48] sm:$0xff] %v1154_v39   ;;  %v485_v0 = vadd.f32 %v1263_v42, %v1438_v28 }
  0xfa   : > { %v549_v3 = vadd.f32 %v1279_v43, %v1438_v28  ;;  %v476_v4 = vpop.f32.mrf.mxu0  ;;  %v540_v5 = vpop.f32.mrf.mxu1  ;;  %v652_v6 = vadd.f32 %v1052_v53, %v474_v40  ;;  %v668_v9 = vadd.f32 %v1084_v54, %v538_v41  ;;  %v1104_v53 = vunpack.c.l.bf16 %v1502_v57 }
  0xfb   : > { %1110 = vst [vmem:[%s1492_s20] sm:$0xff] %v1109_v44   ;;  %1208 = vst [vmem:[%s1492_s20 + $0x40] sm:$0xff] %v1149_v45   ;;  %v477_v10 = vadd.f32 %v1438_v28, %v476_v4  ;;  %v541_v47 = vadd.f32 %v1438_v28, %v540_v5  ;;  %v655_v48 = vadd.f32 %v1057_v59, %v485_v0  ;;  %v686_v30 = vmax.f32 %v654_v58, 0.0 }
  0xfc   : > { %v671_v11 = vadd.f32 %v1089_v60, %v549_v3  ;;  %v1266_v12 = vpop.f32.mrf.mxu0  ;;  %v1282_v13 = vpop.f32.mrf.mxu1  ;;  %v702_v60 = vmax.f32 %v670_v63, 0.0  ;;  %v684_v22 = vmax.f32 %v652_v6, 0.0  ;;  %v700_v23 = vmax.f32 %v668_v9, 0.0 }
  0xfd   : > { %v653_v54 = vadd.f32 %v1053_v61, %v477_v10  ;;  %v669_v15 = vadd.f32 %v1085_v62, %v541_v47  ;;  %v498_v29 = vadd.f32 %v1266_v12, %v1438_v28  ;;  %v562_v59 = vadd.f32 %v1282_v13, %v1438_v28  ;;  %v1533_v61 = vld [vmem:[%s1429_s14 + $0x30] sm:$0xff]  }
  0xfe   : > { %v687_v16 = vmax.f32 %v655_v48, 0.0  ;;  %v703_v19 = vmax.f32 %v671_v11, 0.0  ;;  %v489_v20 = vpop.f32.mrf.mxu0  ;;  %v553_v21 = vpop.f32.mrf.mxu1  ;;  %v1068_v43 = vunpack.c.l.bf16 %v1533_v61  ;;  %v1100_v44 = vunpack.c.l.bf16 %v1536_v38 }
  0xff   : > { %v685_v37 = vmax.f32 %v653_v54, 0.0  ;;  %v701_v24 = vmax.f32 %v669_v15, 0.0  ;;  %v490_v26 = vadd.f32 %v1438_v28, %v489_v20  ;;  %v554_v27 = vadd.f32 %v1438_v28, %v553_v21 }
 0x100   : > { %v1124_v62 = vpack.c.bf16 %v687_v16, %v686_v30  ;;  %v1164_v25 = vpack.c.bf16 %v703_v19, %v702_v60  ;;  %v1267_v31 = vpop.f32.mrf.mxu0  ;;  %v1283_v32 = vpop.f32.mrf.mxu1  ;;  %v658_v35 = vadd.f32 %v1064_v1, %v498_v29  ;;  %v674_v36 = vadd.f32 %v1096_v2, %v562_v59 }
 0x101   : > { %v1119_v33 = vpack.c.bf16 %v685_v37, %v684_v22  ;;  %v1159_v34 = vpack.c.bf16 %v701_v24, %v700_v23  ;;  %v501_v39 = vadd.f32 %v1267_v31, %v1438_v28  ;;  %v565_v40 = vadd.f32 %v1283_v32, %v1438_v28 }
 0x102   : > { %1203 = vst [vmem:[%s1492_s20 + $0x18] sm:$0xff] %v1124_v62   ;;  %1211 = vst [vmem:[%s1492_s20 + $0x58] sm:$0xff] %v1164_v25   ;;  %v492_v41 = vpop.f32.mrf.mxu0  ;;  %v556_v42 = vpop.f32.mrf.mxu1  ;;  %v656_v1 = vadd.f32 %v1060_v7, %v490_v26  ;;  %v672_v2 = vadd.f32 %v1092_v8, %v554_v27  ;;  %v1073_v5 = vunpack.c.h.bf16 %v1499_v52  ;;  %v1105_v6 = vunpack.c.h.bf16 %v1502_v57 }
 0x103   : > { %1202 = vst [vmem:[%s1492_s20 + $0x10] sm:$0xff] %v1119_v33   ;;  %1210 = vst [vmem:[%s1492_s20 + $0x50] sm:$0xff] %v1159_v34   ;;  %v493_v45 = vadd.f32 %v1438_v28, %v492_v41  ;;  %v557_v58 = vadd.f32 %v1438_v28, %v556_v42  ;;  %v659_v63 = vadd.f32 %v1065_v17, %v501_v39  ;;  %v690_v7 = vmax.f32 %v658_v35, 0.0 }
 0x104   : > { %v675_v0 = vadd.f32 %v1097_v18, %v565_v40  ;;  %v1270_v3 = vpop.f32.mrf.mxu0  ;;  %v1286_v4 = vpop.f32.mrf.mxu1  ;;  %v706_v9 = vmax.f32 %v674_v36, 0.0  ;;  %v688_v11 = vmax.f32 %v656_v1, 0.0  ;;  %v704_v12 = vmax.f32 %v672_v2, 0.0 }
 0x105   : > { %v657_v8 = vadd.f32 %v1061_v46, %v493_v45  ;;  %v673_v10 = vadd.f32 %v1093_v51, %v557_v58  ;;  %v691_v47 = vmax.f32 %v659_v63, 0.0  ;;  %v514_v17 = vadd.f32 %v1270_v3, %v1438_v28 }
 0x106   : > { %v707_v49 = vmax.f32 %v675_v0, 0.0  ;;  %v578_v50 = vadd.f32 %v1286_v4, %v1438_v28  ;;  %v505_v18 = vpop.f32.mrf.mxu0  ;;  %v569_v48 = vpop.f32.mrf.mxu1  ;;  %v1069_v60 = vunpack.c.h.bf16 %v1533_v61  ;;  %v1101_v16 = vunpack.c.h.bf16 %v1536_v38 }
 0x107   : > { %v689_v13 = vmax.f32 %v657_v8, 0.0  ;;  %v705_v54 = vmax.f32 %v673_v10, 0.0  ;;  %v1134_v15 = vpack.c.bf16 %v691_v47, %v690_v7  ;;  %v506_v46 = vadd.f32 %v1438_v28, %v505_v18 }
 0x108   : > { %v1174_v55 = vpack.c.bf16 %v707_v49, %v706_v9  ;;  %v570_v56 = vadd.f32 %v1438_v28, %v569_v48  ;;  %v1271_v51 = vpop.f32.mrf.mxu0  ;;  %v1287_v29 = vpop.f32.mrf.mxu1  ;;  %v662_v19 = vadd.f32 %v1072_v14, %v514_v17  ;;  %v678_v20 = vadd.f32 %v1104_v53, %v578_v50 }
 0x109   : > { %v1129_v59 = vpack.c.bf16 %v689_v13, %v688_v11  ;;  %v1169_v30 = vpack.c.bf16 %v705_v54, %v704_v12  ;;  %1205 = vst [vmem:[%s1492_s20 + $0x28] sm:$0xff] %v1134_v15   ;;  %v517_v21 = vadd.f32 %v1271_v51, %v1438_v28  ;;  %v581_v22 = vadd.f32 %v1287_v29, %v1438_v28 }
 0x10a   : > { %1213 = vst [vmem:[%s1492_s20 + $0x68] sm:$0xff] %v1174_v55   ;;  %v508_v23 = vpop.f32.mrf.mxu0  ;;  %v572_v37 = vpop.f32.mrf.mxu1  ;;  %v660_v24 = vadd.f32 %v1068_v43, %v506_v46  ;;  %v676_v61 = vadd.f32 %v1100_v44, %v570_v56  ;;  %v694_v53 = vmax.f32 %v662_v19, 0.0  ;;  %v710_v26 = vmax.f32 %v678_v20, 0.0 }
 0x10b   : > { %1204 = vst [vmem:[%s1492_s20 + $0x20] sm:$0xff] %v1129_v59   ;;  %1212 = vst [vmem:[%s1492_s20 + $0x60] sm:$0xff] %v1169_v30   ;;  %v509_v38 = vadd.f32 %v1438_v28, %v508_v23  ;;  %v573_v62 = vadd.f32 %v1438_v28, %v572_v37  ;;  %v663_v25 = vadd.f32 %v1073_v5, %v517_v21 }
 0x10c   : > { %v679_v52 = vadd.f32 %v1105_v6, %v581_v22  ;;  %v692_v32 = vmax.f32 %v660_v24, 0.0  ;;  %v708_v33 = vmax.f32 %v676_v61, 0.0 }
 0x10d   : > { %v661_v57 = vadd.f32 %v1069_v60, %v509_v38  ;;  %v677_v14 = vadd.f32 %v1101_v16, %v573_v62  ;;  %v695_v27 = vmax.f32 %v663_v25, 0.0 }
 0x10e   : > { %v711_v31 = vmax.f32 %v679_v52, 0.0 }
 0x10f   : > { %v693_v34 = vmax.f32 %v661_v57, 0.0  ;;  %v709_v35 = vmax.f32 %v677_v14, 0.0  ;;  %v1144_v36 = vpack.c.bf16 %v695_v27, %v694_v53 }
 0x110   : > { %v1184_v39 = vpack.c.bf16 %v711_v31, %v710_v26 }
 0x111   : > { %v1139_v40 = vpack.c.bf16 %v693_v34, %v692_v32  ;;  %v1179_v28 = vpack.c.bf16 %v709_v35, %v708_v33  ;;  %1207 = vst [vmem:[%s1492_s20 + $0x38] sm:$0xff] %v1144_v36  }
 0x112   : > { %1215 = vst [vmem:[%s1492_s20 + $0x78] sm:$0xff] %v1184_v39  }
 0x113   : > { %1206 = vst [vmem:[%s1492_s20 + $0x30] sm:$0xff] %v1139_v40   ;;  %1214 = vst [vmem:[%s1492_s20 + $0x70] sm:$0xff] %v1179_v28  }
 0x114 PF: > { %s14_s15 = sadd.s32 1, %s1342_s15  }
 0x115   : > { %p11_p4 = scmp.ge.s32.totalorder %s14_s15, 4  }
 0x117   :  { %13 = sbr.rel (!%p11_p4) target bundleno = 1 (0x1), region = 69 }

// kernel: cifar_resnet_forward.11
= control target key start
LH: loop header
LB: loop body
LE: loop exit
PB: predicated region body
PF: predicated region fallthrough
CT: control target
= control target key end

     0   :  { %s610_s12 = smov 0   ;;  %s667_s0 = inlined_call_operand.vmem [shape: bf16[128,128], index: 0, kind: input, shape index: {}]   ;;  %s668_s1 = inlined_call_operand.vmem [shape: bf16[128,128], index: 1, kind: input, shape index: {}]   ;;  %s669_s2 = inlined_call_operand.vmem [shape: f32[1,128], index: 2, kind: input, shape index: {}]   ;;  %s670_s3 = inlined_call_operand.vmem [shape: bf16[128,128], index: 3, kind: output, shape index: {}]  }
   0x1 LB: > { %s447_s13 = sadd.s32 4294967295, %s588_s12   ;;  %p451_p0 = scmp.ge.s32.totalorder %s588_s12, 1  ;;  %s588_s12 = sphi %s610_s12, %s13_s12  }
   0x2   : > { %p138_p1 = scmp.lt.s32.totalorder %s588_s12, 3 }
   0x4   : > { %p139_p2 = pnand %p451_p0, %p138_p1 }
   0x5   : > { %s452_s16 = sshll.u32 (!%p139_p2), %s447_s13, 3 }
   0x6   : > { %142 = sbr.rel (%p139_p2) target bundleno = 250 (0xfa), region = 32  ;;  %p163_p3 = scmp.lt.s32.totalorder (!%p139_p2), %s452_s16, 15 }
   0xb   : > { %v570_v0 = vld [vmem:[%s668_s1 + $0x38] sm:$0xff]   ;;  %v571_v1 = vld [vmem:[%s668_s1 + $0x30] sm:$0xff]   ;;  %s672_s16 = smov (!%p163_p3, %s452_s16), 15  ;;  %v572_v2 = vld [vmem:[%s668_s1 + $0x28] sm:$0xff]  }
   0xc   : > { %522 = vmatprep.subr.bf16.mxu0 %v570_v0  ;;  %546 = vmatprep.subr.bf16.mxu1 %v570_v0  ;;  %s453_s21 = sshll.u32 %s672_s16, 2  ;;  %v573_v3 = vld [vmem:[%s668_s1 + $0x20] sm:$0xff]   ;;  %v574_v6 = vld [vmem:[%s668_s1 + $0x18] sm:$0xff]   ;;  %v575_v7 = vld [vmem:[%s668_s1 + $0x10] sm:$0xff]  }
   0xd   : > { %523 = vmatpush3.bf16.msra.mxu0 %v570_v0  ;;  %554 = vmatpush3.bf16.msra.mxu1 %v570_v0  ;;  %s635_s24 = scalar_lea.vmem %s667_s0, %s453_s21  ;;  %v576_v8 = vld [vmem:[%s668_s1 + $0x8] sm:$0xff]   ;;  %v577_v9 = vld [vmem:[%s668_s1] sm:$0xff]   ;;  %s172_s13 = scalar_lea.vmem %s670_s3, %s453_s21 }
   0xe   : > { %524 = vmatprep.subr.bf16.mxu0 %v571_v1  ;;  %547 = vmatprep.subr.bf16.mxu1 %v571_v1  ;;  %v578_v4 = vld [vmem:[%s635_s24] sm:$0xff]   ;;  %v579_v5 = vld [vmem:[%s635_s24 + $0x10] sm:$0xff]   ;;  %v580_v10 = vld [vmem:[%s635_s24 + $0x8] sm:$0xff]  }
   0xf   : > { %538 = vmatprep.mubr.bf16.mxu0 %v578_v4  ;;  %542 = vmatprep.mubr.bf16.mxu1 %v579_v5  ;;  %v581_v11 = vld [vmem:[%s635_s24 + $0x18] sm:$0xff]   ;;  %v456_v12 = vld [vmem:[%s669_s2] ss:$0 sm:$0xff] }
  0x11   : > { %525 = vmatpush3.bf16.msra.mxu0 %v571_v1  ;;  %555 = vmatpush3.bf16.msra.mxu1 %v571_v1 }
  0x12   : > { %526 = vmatprep.subr.bf16.mxu0 %v572_v2  ;;  %548 = vmatprep.subr.bf16.mxu1 %v572_v2 }
  0x15   : > { %527 = vmatpush3.bf16.msra.mxu0 %v572_v2  ;;  %556 = vmatpush3.bf16.msra.mxu1 %v572_v2 }
  0x16   : > { %528 = vmatprep.subr.bf16.mxu0 %v573_v3  ;;  %549 = vmatprep.subr.bf16.mxu1 %v573_v3 }
  0x19   : > { %529 = vmatpush3.bf16.msra.mxu0 %v573_v3  ;;  %557 = vmatpush3.bf16.msra.mxu1 %v573_v3 }
  0x1a   : > { %530 = vmatprep.subr.bf16.mxu0 %v574_v6  ;;  %550 = vmatprep.subr.bf16.mxu1 %v574_v6 }
  0x1d   : > { %531 = vmatpush3.bf16.msra.mxu0 %v574_v6  ;;  %558 = vmatpush3.bf16.msra.mxu1 %v574_v6 }
  0x1e   : > { %532 = vmatprep.subr.bf16.mxu0 %v575_v7  ;;  %551 = vmatprep.subr.bf16.mxu1 %v575_v7 }
  0x21   : > { %533 = vmatpush3.bf16.msra.mxu0 %v575_v7  ;;  %559 = vmatpush3.bf16.msra.mxu1 %v575_v7 }
  0x22   : > { %534 = vmatprep.subr.bf16.mxu0 %v576_v8  ;;  %552 = vmatprep.subr.bf16.mxu1 %v576_v8 }
  0x25   : > { %535 = vmatpush3.bf16.msra.mxu0 %v576_v8  ;;  %560 = vmatpush3.bf16.msra.mxu1 %v576_v8 }
  0x26   : > { %536 = vmatprep.subr.bf16.mxu0 %v577_v9  ;;  %553 = vmatprep.subr.bf16.mxu1 %v577_v9 }
  0x29   : > { %537 = vmatpush3.bf16.msra.mxu0 %v577_v9  ;;  %561 = vmatpush3.bf16.msra.mxu1 %v577_v9 }
  0x2c   : > { %539 = vmatmul.mubr.bf16.vlgmr.msra.gmra.mxu0 %v580_v10  ;;  %543 = vmatmul.mubr.bf16.vlgmr.msra.gmra.mxu1 %v581_v11 }
  0xec   : > { %v540_v13 = vpop.f32.mrf.mxu0  ;;  %v544_v14 = vpop.f32.mrf.mxu1 }
  0xed   : > { %v321_v15 = vadd.f32 %v540_v13, %v456_v12  ;;  %v337_v16 = vadd.f32 %v544_v14, %v456_v12 }
  0xee   : > { %v312_v17 = vpop.f32.mrf.mxu0  ;;  %v328_v18 = vpop.f32.mrf.mxu1 }
  0xef   : > { %v313_v19 = vadd.f32 %v456_v12, %v312_v17  ;;  %v329_v20 = vadd.f32 %v456_v12, %v328_v18  ;;  %v345_v25 = vmax.f32 %v321_v15, 0.0  ;;  %v349_v26 = vmax.f32 %v337_v16, 0.0 }
  0xf0   : > { %v541_v21 = vpop.f32.mrf.mxu0  ;;  %v545_v22 = vpop.f32.mrf.mxu1 }
  0xf1   : > { %v324_v23 = vadd.f32 %v541_v21, %v456_v12  ;;  %v340_v24 = vadd.f32 %v545_v22, %v456_v12  ;;  %v343_v33 = vmax.f32 %v313_v19, 0.0  ;;  %v347_v34 = vmax.f32 %v329_v20, 0.0 }
  0xf2   : > { %v315_v27 = vpop.f32.mrf.mxu0  ;;  %v331_v28 = vpop.f32.mrf.mxu1 }
  0xf3   : > { %v346_v29 = vmax.f32 %v324_v23, 0.0  ;;  %v350_v30 = vmax.f32 %v340_v24, 0.0  ;;  %v316_v31 = vadd.f32 %v456_v12, %v315_v27  ;;  %v332_v32 = vadd.f32 %v456_v12, %v331_v28 }
  0xf5   : > { %v495_v35 = vpack.c.bf16 %v346_v29, %v345_v25  ;;  %v505_v36 = vpack.c.bf16 %v350_v30, %v349_v26  ;;  %v344_v37 = vmax.f32 %v316_v31, 0.0  ;;  %v348_v38 = vmax.f32 %v332_v32, 0.0 }
  0xf7   : > { %507 = vst [vmem:[%s172_s13 + $0x8] sm:$0xff] %v495_v35   ;;  %509 = vst [vmem:[%s172_s13 + $0x18] sm:$0xff] %v505_v36   ;;  %v490_v39 = vpack.c.bf16 %v344_v37, %v343_v33  ;;  %v500_v40 = vpack.c.bf16 %v348_v38, %v347_v34 }
  0xf9   : > { %491 = vst [vmem:[%s172_s13] sm:$0xff] %v490_v39   ;;  %508 = vst [vmem:[%s172_s13 + $0x10] sm:$0xff] %v500_v40  }
  0xfa PF: > { %s13_s12 = sadd.s32 1, %s588_s12  }
  0xfb   : > { %p10_p4 = scmp.ge.s32.totalorder %s13_s12, 4  }
  0xfd   :  { %12 = sbr.rel (!%p10_p4) target bundleno = 1 (0x1), region = 62 }

// kernel: cifar_resnet_forward.12
= control target key start
LH: loop header
LB: loop body
LE: loop exit
PB: predicated region body
PF: predicated region fallthrough
CT: control target
= control target key end

     0   :  { %s1088_s21 = smov 0   ;;  %s1220_s0 = inlined_call_operand.vmem [shape: bf16[128,256], index: 0, kind: input, shape index: {}]   ;;  %s1221_s1 = inlined_call_operand.vmem [shape: bf16[256,128], index: 1, kind: input, shape index: {}]   ;;  %s1222_s2 = inlined_call_operand.vmem [shape: f32[1,128], index: 2, kind: input, shape index: {}]   ;;  %s1223_s3 = inlined_call_operand.vmem [shape: bf16[128,128], index: 3, kind: input, shape index: {}]   ;;  %s1224_s4 = inlined_call_operand.vmem [shape: bf16[128,128], index: 4, kind: input, shape index: {}]   ;;  %s1225_s5 = inlined_call_operand.vmem [shape: f32[1,128], index: 5, kind: input, shape index: {}]   ;;  %s1226_s6 = inlined_call_operand.vmem [shape: bf16[128,128], index: 6, kind: output, shape index: {}]  }
   0x1 LB: > { %s829_s22 = sadd.s32 4294967295, %s1051_s21   ;;  %p833_p0 = scmp.ge.s32.totalorder %s1051_s21, 1  ;;  %s1051_s21 = sphi %s1088_s21, %s16_s21  }
   0x2   : > { %p225_p1 = scmp.lt.s32.totalorder %s1051_s21, 3 }
   0x4   : > { %p226_p2 = pnand %p833_p0, %p225_p1 }
   0x5   : > { %s834_s15 = sshll.u32 (!%p226_p2), %s829_s22, 3 }
   0x6   : > { %229 = sbr.rel (%p226_p2) target bundleno = 280 (0x118), region = 44  ;;  %p262_p3 = scmp.lt.s32.totalorder (!%p226_p2), %s834_s15, 15 }
   0xb   : > { %v1005_v0 = vld [vmem:[%s1221_s1 + $0x78] sm:$0xff]   ;;  %v1008_v3 = vld [vmem:[%s1221_s1 + $0x70] sm:$0xff]   ;;  %v1011_v6 = vld [vmem:[%s1221_s1 + $0x68] sm:$0xff]   ;;  %s1228_s15 = smov (!%p262_p3, %s834_s15), 15 }
   0xc   : > { %v1006_v1 = vld [vmem:[%s1221_s1 + $0x38] sm:$0xff]   ;;  %933 = vmatprep.subr.bf16.mxu1 %v1005_v0  ;;  %v1009_v4 = vld [vmem:[%s1221_s1 + $0x30] sm:$0xff]   ;;  %v1012_v7 = vld [vmem:[%s1221_s1 + $0x28] sm:$0xff]   ;;  %s889_s11 = sshll.u32 %s1228_s15, 3  ;;  %s838_s17 = sshll.u32 %s1228_s15, 2 }
   0xd   : > { %v1007_v2 = vld [vmem:[%s1224_s4 + $0x38] sm:$0xff]   ;;  %934 = vmatpush3.bf16.msra.mxu1 %v1006_v1  ;;  %v1010_v5 = vld [vmem:[%s1224_s4 + $0x30] sm:$0xff]   ;;  %v1013_v8 = vld [vmem:[%s1224_s4 + $0x28] sm:$0xff]   ;;  %s1163_s24 = scalar_lea.vmem %s1220_s0, %s889_s11  ;;  %s272_s30 = scalar_lea.vmem %s1223_s3, %s838_s17 }
   0xe   : > { %973 = vmatprep.subr.bf16.mxu0 %v1007_v2  ;;  %935 = vmatprep.subr.bf16.mxu1 %v1008_v3  ;;  %v1014_v9 = vld [vmem:[%s1221_s1 + $0x60] sm:$0xff]   ;;  %v1017_v12 = vld [vmem:[%s1221_s1 + $0x58] sm:$0xff]   ;;  %v1020_v15 = vld [vmem:[%s1221_s1 + $0x50] sm:$0xff]   ;;  %s1206_s19 = scalar_lea.vmem %s1226_s6, %s838_s17 }
   0xf   : > { %974 = vmatpush3.bf16.msra.mxu0 %v1007_v2  ;;  %v1015_v10 = vld [vmem:[%s1221_s1 + $0x20] sm:$0xff]   ;;  %v1019_v13 = vld [vmem:[%s1224_s4 + $0x18] sm:$0xff]   ;;  %v1022_v16 = vld [vmem:[%s1224_s4 + $0x10] sm:$0xff]  }
  0x10   : > { %975 = vmatprep.subr.bf16.mxu0 %v1010_v5  ;;  %v1016_v11 = vld [vmem:[%s1224_s4 + $0x20] sm:$0xff]   ;;  %v1018_v14 = vld [vmem:[%s1221_s1 + $0x18] sm:$0xff]   ;;  %v1021_v17 = vld [vmem:[%s1221_s1 + $0x10] sm:$0xff]  }
  0x11   : > { %936 = vmatpush3.bf16.msra.mxu1 %v1009_v4  ;;  %v1023_v18 = vld [vmem:[%s1221_s1 + $0x48] sm:$0xff]   ;;  %v1026_v21 = vld [vmem:[%s1221_s1 + $0x40] sm:$0xff]   ;;  %v1034_v27 = vld [vmem:[%s1163_s24 + $0x14] ss:$8 sps:$4 sm:$0xff]  }
  0x12   : > { %937 = vmatprep.subr.bf16.mxu1 %v1011_v6  ;;  %v1024_v19 = vld [vmem:[%s1221_s1 + $0x8] sm:$0xff]   ;;  %v1031_v23 = vld [vmem:[%s1224_s4] sm:$0xff]   ;;  %v1040_v29 = vld [vmem:[%s272_s30 + $0x10] sm:$0xff]  }
  0x13   : > { %976 = vmatpush3.bf16.msra.mxu0 %v1010_v5  ;;  %v1025_v20 = vld [vmem:[%s1224_s4 + $0x8] sm:$0xff]   ;;  %v1032_v24 = vld [vmem:[%s272_s30] sm:$0xff]   ;;  %v1036_v30 = vld [vmem:[%s1163_s24 + $0x10] ss:$8 sps:$4 sm:$0xff]  }
  0x14   : > { %977 = vmatprep.subr.bf16.mxu0 %v1013_v8  ;;  %v1030_v22 = vld [vmem:[%s1163_s24 + $0x4] ss:$8 sps:$4 sm:$0xff]   ;;  %989 = vmatprep.mubr.bf16.mxu0 %v1032_v24  ;;  %v1028_v26 = vld [vmem:[%s1163_s24] ss:$8 sps:$4 sm:$0xff]   ;;  %v1041_v32 = vld [vmem:[%s272_s30 + $0x18] sm:$0xff]  }
  0x15   : > { %938 = vmatpush3.bf16.msra.mxu1 %v1012_v7  ;;  %657 = vmatprep.mubr.bf16.mxu1 %v1030_v22  ;;  %v1027_v25 = vld [vmem:[%s1221_s1] sm:$0xff]   ;;  %v1033_v28 = vld [vmem:[%s272_s30 + $0x8] sm:$0xff]   ;;  %v1042_v34 = vld [vmem:[%s1163_s24 + $0x34] ss:$8 sps:$4 sm:$0xff]  }
  0x16   : > { %939 = vmatprep.subr.bf16.mxu1 %v1014_v9  ;;  %v1037_v31 = vld [vmem:[%s1163_s24 + $0x24] ss:$8 sps:$4 sm:$0xff]   ;;  %v1039_v33 = vld [vmem:[%s1163_s24 + $0x20] ss:$8 sps:$4 sm:$0xff]   ;;  %v1044_v35 = vld [vmem:[%s1163_s24 + $0x30] ss:$8 sps:$4 sm:$0xff]  }
  0x17   : > { %978 = vmatpush3.bf16.msra.mxu0 %v1013_v8  ;;  %v1193_v39 = vld [vmem:[%s1222_s2] ss:$0 sm:$0xff] }
  0x18   : > { %979 = vmatprep.subr.bf16.mxu0 %v1016_v11  ;;  %v878_v48 = vld [vmem:[%s1225_s5] ss:$0 sm:$0xff] }
  0x19   : > { %940 = vmatpush3.bf16.msra.mxu1 %v1015_v10 }
  0x1a   : > { %941 = vmatprep.subr.bf16.mxu1 %v1017_v12 }
  0x1b   : > { %980 = vmatpush3.bf16.msra.mxu0 %v1016_v11 }
  0x1c   : > { %981 = vmatprep.subr.bf16.mxu0 %v1019_v13 }
  0x1d   : > { %942 = vmatpush3.bf16.msra.mxu1 %v1018_v14 }
  0x1e   : > { %943 = vmatprep.subr.bf16.mxu1 %v1020_v15 }
  0x1f   : > { %982 = vmatpush3.bf16.msra.mxu0 %v1019_v13 }
  0x20   : > { %983 = vmatprep.subr.bf16.mxu0 %v1022_v16 }
  0x21   : > { %944 = vmatpush3.bf16.msra.mxu1 %v1021_v17 }
  0x22   : > { %945 = vmatprep.subr.bf16.mxu1 %v1023_v18 }
  0x23   : > { %984 = vmatpush3.bf16.msra.mxu0 %v1022_v16 }
  0x24   : > { %985 = vmatprep.subr.bf16.mxu0 %v1025_v20 }
  0x25   : > { %946 = vmatpush3.bf16.msra.mxu1 %v1024_v19 }
  0x26   : > { %947 = vmatprep.subr.bf16.mxu1 %v1026_v21 }
  0x27   : > { %986 = vmatpush3.bf16.msra.mxu0 %v1025_v20 }
  0x28   : > { %987 = vmatprep.subr.bf16.mxu0 %v1031_v23 }
  0x29   : > { %948 = vmatpush3.bf16.msra.mxu1 %v1027_v25 }
  0x2b   : > { %988 = vmatpush3.bf16.msra.mxu0 %v1031_v23 }
  0x2c   : > { %658 = vmatmul.mubr.bf16.vlgmr.msra.gmra.mxu1 %v1028_v26 }
  0x2d   : > { %665 = vmatprep.mubr.bf16.mxu1 %v1034_v27 }
  0x2e   : > { %990 = vmatmul.mubr.bf16.vlgmr.msra.gmra.mxu0 %v1033_v28 }
  0x2f   : > { %993 = vmatprep.mubr.bf16.mxu0 %v1040_v29 }
  0x34   : > { %666 = vmatmul.mubr.bf16.gmra.mxu1 %v1036_v30 }
  0x35   : > { %673 = vmatprep.mubr.bf16.mxu1 %v1037_v31 }
  0x36   : > { %994 = vmatmul.mubr.bf16.gmra.mxu0 %v1041_v32 }
  0x3c   : > { %674 = vmatmul.mubr.bf16.gmra.mxu1 %v1039_v33 }
  0x3d   : > { %681 = vmatprep.mubr.bf16.mxu1 %v1042_v34 }
  0x44   : > { %682 = vmatmul.mubr.bf16.gmra.mxu1 %v1044_v35 }
  0xec   : > { %v949_v36 = vpop.f32.mrf.mxu1 }
  0xee   : > { %v950_v37 = vpop.f32.mrf.mxu1  ;;  %v991_v38 = vpop.f32.mrf.mxu0 }
  0xef   : > { %v951_v40 = vadd.f32 %v950_v37, %v949_v36 }
  0xf0   : > { %v952_v41 = vpop.f32.mrf.mxu1  ;;  %v451_v42 = vpop.f32.mrf.mxu0 }
  0xf1   : > { %v660_v43 = vadd.f32 %v951_v40, %v1193_v39 }
  0xf2   : > { %v953_v44 = vpop.f32.mrf.mxu1  ;;  %v992_v45 = vpop.f32.mrf.mxu0 }
  0xf3   : > { %v690_v46 = vadd.f32 %v660_v43, %v451_v42  ;;  %v954_v47 = vadd.f32 %v953_v44, %v952_v41 }
  0xf4   : > { %v955_v49 = vpop.f32.mrf.mxu1  ;;  %v454_v50 = vpop.f32.mrf.mxu0 }
  0xf5   : > { %v663_v51 = vadd.f32 %v954_v47, %v1193_v39  ;;  %v705_v53 = vadd.f32 %v878_v48, %v690_v46 }
  0xf6   : > { %v956_v52 = vpop.f32.mrf.mxu1  ;;  %v995_v57 = vpop.f32.mrf.mxu0 }
  0xf7   : > { %v691_v54 = vadd.f32 %v663_v51, %v454_v50  ;;  %v957_v55 = vadd.f32 %v956_v52, %v955_v49  ;;  %v713_v61 = vmax.f32 %v705_v53, 0.0 }
  0xf8   : > { %v958_v56 = vpop.f32.mrf.mxu1  ;;  %v467_v2 = vpop.f32.mrf.mxu0 }
  0xf9   : > { %v706_v58 = vadd.f32 %v878_v48, %v691_v54  ;;  %v668_v59 = vadd.f32 %v957_v55, %v1193_v39 }
  0xfa   : > { %v959_v60 = vpop.f32.mrf.mxu1  ;;  %v996_v10 = vpop.f32.mrf.mxu0 }
  0xfb   : > { %v714_v62 = vmax.f32 %v706_v58, 0.0  ;;  %v692_v63 = vadd.f32 %v991_v38, %v668_v59  ;;  %v960_v0 = vadd.f32 %v959_v60, %v958_v56 }
  0xfc   : > { %v961_v1 = vpop.f32.mrf.mxu1  ;;  %v470_v19 = vpop.f32.mrf.mxu0 }
  0xfd   : > { %v901_v3 = vpack.c.bf16 %v714_v62, %v713_v61  ;;  %v671_v4 = vadd.f32 %v960_v0, %v1193_v39  ;;  %v707_v6 = vadd.f32 %v878_v48, %v692_v63 }
  0xfe   : > { %v962_v5 = vpop.f32.mrf.mxu1 }
  0xff   : > { %902 = vst [vmem:[%s1206_s19] sm:$0xff] %v901_v3   ;;  %v693_v7 = vadd.f32 %v992_v45, %v671_v4  ;;  %v963_v8 = vadd.f32 %v962_v5, %v961_v1  ;;  %v715_v14 = vmax.f32 %v707_v6, 0.0 }
 0x100   : > { %v964_v9 = vpop.f32.mrf.mxu1 }
 0x101   : > { %v708_v11 = vadd.f32 %v878_v48, %v693_v7  ;;  %v676_v12 = vadd.f32 %v963_v8, %v1193_v39 }
 0x102   : > { %v965_v13 = vpop.f32.mrf.mxu1 }
 0x103   : > { %v716_v15 = vmax.f32 %v708_v11, 0.0  ;;  %v694_v16 = vadd.f32 %v676_v12, %v467_v2  ;;  %v966_v17 = vadd.f32 %v965_v13, %v964_v9 }
 0x104   : > { %v967_v18 = vpop.f32.mrf.mxu1 }
 0x105   : > { %v906_v20 = vpack.c.bf16 %v716_v15, %v715_v14  ;;  %v679_v21 = vadd.f32 %v966_v17, %v1193_v39  ;;  %v709_v23 = vadd.f32 %v878_v48, %v694_v16 }
 0x106   : > { %v968_v22 = vpop.f32.mrf.mxu1 }
 0x107   : > { %918 = vst [vmem:[%s1206_s19 + $0x8] sm:$0xff] %v906_v20   ;;  %v695_v24 = vadd.f32 %v679_v21, %v470_v19  ;;  %v969_v25 = vadd.f32 %v968_v22, %v967_v18  ;;  %v717_v30 = vmax.f32 %v709_v23, 0.0 }
 0x108   : > { %v970_v26 = vpop.f32.mrf.mxu1 }
 0x109   : > { %v710_v27 = vadd.f32 %v878_v48, %v695_v24  ;;  %v684_v28 = vadd.f32 %v969_v25, %v1193_v39 }
 0x10a   : > { %v971_v29 = vpop.f32.mrf.mxu1 }
 0x10b   : > { %v718_v31 = vmax.f32 %v710_v27, 0.0  ;;  %v696_v32 = vadd.f32 %v995_v57, %v684_v28  ;;  %v972_v33 = vadd.f32 %v971_v29, %v970_v26 }
 0x10d   : > { %v911_v34 = vpack.c.bf16 %v718_v31, %v717_v30  ;;  %v687_v35 = vadd.f32 %v972_v33, %v1193_v39  ;;  %v711_v36 = vadd.f32 %v878_v48, %v696_v32 }
 0x10f   : > { %919 = vst [vmem:[%s1206_s19 + $0x10] sm:$0xff] %v911_v34   ;;  %v697_v37 = vadd.f32 %v996_v10, %v687_v35  ;;  %v719_v40 = vmax.f32 %v711_v36, 0.0 }
 0x111   : > { %v712_v38 = vadd.f32 %v878_v48, %v697_v37 }
 0x113   : > { %v720_v41 = vmax.f32 %v712_v38, 0.0 }
 0x115   : > { %v916_v42 = vpack.c.bf16 %v720_v41, %v719_v40 }
 0x117   : > { %920 = vst [vmem:[%s1206_s19 + $0x18] sm:$0xff] %v916_v42  }
 0x118 PF: > { %s16_s21 = sadd.s32 1, %s1051_s21  }
 0x119   : > { %p13_p4 = scmp.ge.s32.totalorder %s16_s21, 4  }
 0x11b   :  { %15 = sbr.rel (!%p13_p4) target bundleno = 1 (0x1), region = 77 }

// kernel: cifar_resnet_forward.13
= control target key start
LH: loop header
LB: loop body
LE: loop exit
PB: predicated region body
PF: predicated region fallthrough
CT: control target
= control target key end

     0   :  { %s552_s12 = smov 0   ;;  %s624_s0 = inlined_call_operand.vmem [shape: bf16[32,256], index: 0, kind: input, shape index: {}]   ;;  %s625_s1 = inlined_call_operand.vmem [shape: bf16[256,128], index: 1, kind: input, shape index: {}]   ;;  %s626_s2 = inlined_call_operand.vmem [shape: f32[1,128], index: 2, kind: input, shape index: {}]   ;;  %s627_s3 = inlined_call_operand.vmem [shape: bf16[32,128], index: 3, kind: output, shape index: {}]  }
   0x1 LB: > { %s434_s13 = sadd.s32 4294967295, %s530_s12   ;;  %p438_p0 = scmp.ge.s32.totalorder %s530_s12, 1  ;;  %s530_s12 = sphi %s552_s12, %s13_s12  }
   0x2   : > { %p139_p1 = scmp.lt.s32.totalorder %s530_s12, 3 }
   0x4   : > { %p140_p2 = pnand %p438_p0, %p139_p1 }
   0x5   : > { %s439_s16 = sshll.u32 (!%p140_p2), %s434_s13, 1 }
   0x6   : > { %143 = sbr.rel (%p140_p2) target bundleno = 252 (0xfc), region = 32  ;;  %p165_p3 = scmp.lt.s32.totalorder (!%p140_p2), %s439_s16, 3 }
   0xb   : > { %v505_v0 = vld [vmem:[%s625_s1 + $0x78] sm:$0xff]   ;;  %v507_v2 = vld [vmem:[%s625_s1 + $0x70] sm:$0xff]   ;;  %v509_v4 = vld [vmem:[%s625_s1 + $0x68] sm:$0xff]   ;;  %s629_s16 = smov (!%p165_p3, %s439_s16), 3 }
   0xc   : > { %v506_v1 = vld [vmem:[%s625_s1 + $0x38] sm:$0xff]   ;;  %475 = vmatprep.subr.bf16.mxu0 %v505_v0  ;;  %v508_v3 = vld [vmem:[%s625_s1 + $0x30] sm:$0xff]   ;;  %v510_v5 = vld [vmem:[%s625_s1 + $0x28] sm:$0xff]   ;;  %s467_s4 = sshll.u32 %s629_s16, 3  ;;  %s443_s28 = sshll.u32 %s629_s16, 2 }
   0xd   : > { %476 = vmatpush3.bf16.msra.mxu0 %v506_v1  ;;  %v511_v6 = vld [vmem:[%s625_s1 + $0x60] sm:$0xff]   ;;  %v513_v8 = vld [vmem:[%s625_s1 + $0x58] sm:$0xff]   ;;  %s169_s9 = scalar_lea.vmem %s624_s0, %s467_s4  ;;  %v515_v10 = vld [vmem:[%s625_s1 + $0x50] sm:$0xff]   ;;  %s175_s4 = scalar_lea.vmem %s627_s3, %s443_s28 }
   0xe   : > { %477 = vmatprep.subr.bf16.mxu0 %v507_v2  ;;  %v512_v7 = vld [vmem:[%s625_s1 + $0x20] sm:$0xff]   ;;  %v514_v9 = vld [vmem:[%s625_s1 + $0x18] sm:$0xff]   ;;  %v516_v12 = vld [vmem:[%s625_s1 + $0x10] sm:$0xff]  }
   0xf   : > { %v523_v11 = vld [vmem:[%s169_s9 + $0x4] ss:$8 sps:$4 sm:$0xff]   ;;  %v521_v17 = vld [vmem:[%s169_s9] ss:$8 sps:$4 sm:$0xff]  }
  0x10   : > { %357 = vmatprep.mubr.bf16.mxu0 %v523_v11  ;;  %v517_v13 = vld [vmem:[%s625_s1 + $0x48] sm:$0xff]   ;;  %v519_v15 = vld [vmem:[%s625_s1 + $0x40] sm:$0xff]  }
  0x11   : > { %478 = vmatpush3.bf16.msra.mxu0 %v508_v3  ;;  %v518_v14 = vld [vmem:[%s625_s1 + $0x8] sm:$0xff]   ;;  %v520_v16 = vld [vmem:[%s625_s1] sm:$0xff]  }
  0x12   : > { %479 = vmatprep.subr.bf16.mxu0 %v509_v4  ;;  %v444_v21 = vld [vmem:[%s626_s2] ss:$0 sm:$0xff] }
  0x15   : > { %480 = vmatpush3.bf16.msra.mxu0 %v510_v5 }
  0x16   : > { %481 = vmatprep.subr.bf16.mxu0 %v511_v6 }
  0x19   : > { %482 = vmatpush3.bf16.msra.mxu0 %v512_v7 }
  0x1a   : > { %483 = vmatprep.subr.bf16.mxu0 %v513_v8 }
  0x1d   : > { %484 = vmatpush3.bf16.msra.mxu0 %v514_v9 }
  0x1e   : > { %485 = vmatprep.subr.bf16.mxu0 %v515_v10 }
  0x21   : > { %486 = vmatpush3.bf16.msra.mxu0 %v516_v12 }
  0x22   : > { %487 = vmatprep.subr.bf16.mxu0 %v517_v13 }
  0x25   : > { %488 = vmatpush3.bf16.msra.mxu0 %v518_v14 }
  0x26   : > { %489 = vmatprep.subr.bf16.mxu0 %v519_v15 }
  0x29   : > { %490 = vmatpush3.bf16.msra.mxu0 %v520_v16 }
  0x2c   : > { %358 = vmatmul.mubr.bf16.vlgmr.msra.gmra.mxu0 %v521_v17 }
  0xec   : > { %v491_v18 = vpop.f32.mrf.mxu0 }
  0xee   : > { %v492_v19 = vpop.f32.mrf.mxu0 }
  0xef   : > { %v493_v20 = vadd.f32 %v492_v19, %v491_v18 }
  0xf0   : > { %v494_v22 = vpop.f32.mrf.mxu0 }
  0xf1   : > { %v360_v24 = vadd.f32 %v493_v20, %v444_v21 }
  0xf2   : > { %v495_v23 = vpop.f32.mrf.mxu0 }
  0xf3   : > { %v496_v25 = vadd.f32 %v495_v23, %v494_v22  ;;  %v366_v27 = vmax.f32 %v360_v24, 0.0 }
  0xf5   : > { %v363_v26 = vadd.f32 %v496_v25, %v444_v21 }
  0xf7   : > { %v367_v28 = vmax.f32 %v363_v26, 0.0 }
  0xf9   : > { %v473_v29 = vpack.c.bf16 %v367_v28, %v366_v27 }
  0xfb   : > { %474 = vst [vmem:[%s175_s4] sm:$0xff] %v473_v29  }
  0xfc PF: > { %s13_s12 = sadd.s32 1, %s530_s12  }
  0xfd   : > { %p10_p4 = scmp.ge.s32.totalorder %s13_s12, 4  }
  0xff   :  { %12 = sbr.rel (!%p10_p4) target bundleno = 1 (0x1), region = 62 }

// kernel: cifar_resnet_forward.14
= control target key start
LH: loop header
LB: loop body
LE: loop exit
PB: predicated region body
PF: predicated region fallthrough
CT: control target
= control target key end

     0   :  { %s1019_s21 = smov 0   ;;  %s1174_s0 = inlined_call_operand.vmem [shape: bf16[32,384], index: 0, kind: input, shape index: {}]   ;;  %s1175_s1 = inlined_call_operand.vmem [shape: bf16[384,128], index: 1, kind: input, shape index: {}]   ;;  %s1176_s2 = inlined_call_operand.vmem [shape: f32[1,128], index: 2, kind: input, shape index: {}]   ;;  %s1177_s3 = inlined_call_operand.vmem [shape: bf16[32,128], index: 3, kind: input, shape index: {}]   ;;  %s1178_s4 = inlined_call_operand.vmem [shape: bf16[128,128], index: 4, kind: input, shape index: {}]   ;;  %s1179_s5 = inlined_call_operand.vmem [shape: f32[1,128], index: 5, kind: input, shape index: {}]   ;;  %s1180_s6 = inlined_call_operand.vmem [shape: bf16[32,128], index: 6, kind: output, shape index: {}]  }
   0x1 LB: > { %s786_s22 = sadd.s32 4294967295, %s980_s21   ;;  %p790_p0 = scmp.ge.s32.totalorder %s980_s21, 1  ;;  %s980_s21 = sphi %s1019_s21, %s16_s21  }
   0x2   : > { %p225_p1 = scmp.lt.s32.totalorder %s980_s21, 3 }
   0x4   : > { %p226_p2 = pnand %p790_p0, %p225_p1 }
   0x5   : > { %s791_s27 = sshll.u32 (!%p226_p2), %s786_s22, 1 }
   0x6   : > { %229 = sbr.rel (%p226_p2) target bundleno = 284 (0x11c), region = 44  ;;  %p262_p3 = scmp.lt.s32.totalorder (!%p226_p2), %s791_s27, 3 }
   0xb   : > { %v937_v0 = vld [vmem:[%s1178_s4 + $0x38] sm:$0xff]   ;;  %v982_v1 = vmov 0.0   ;;  %v938_v2 = vld [vmem:[%s1178_s4 + $0x30] sm:$0xff]   ;;  %vm983_vm0 = vmmov 0   ;;  %v939_v4 = vld [vmem:[%s1178_s4 + $0x28] sm:$0xff]   ;;  %s1182_s27 = smov (!%p262_p3, %s791_s27), 3 }
   0xc   : > { %886 = vmatprep.subr.bf16.mxu0 %v982_v1  ;;  %902 = vmatprep.mubr.msk.bf16.mxu0 %vm983_vm0, %v982_v1  ;;  %v942_v3 = vld [vmem:[%s1175_s1 + $0x78] sm:$0xff]   ;;  %v945_v6 = vld [vmem:[%s1175_s1 + $0x70] sm:$0xff]   ;;  %v940_v7 = vld [vmem:[%s1178_s4 + $0x20] sm:$0xff]   ;;  %s794_s16 = sshll.u32 %s1182_s27, 2  ;;  %s926_s22 = smul.u32 12, %s1182_s27 }
   0xd   : > { %887 = vmatpush3.bf16.msra.mxu0 %v937_v0  ;;  %855 = vmatprep.subr.bf16.mxu1 %v942_v3  ;;  %v944_v5 = vld [vmem:[%s1175_s1 + $0x38] sm:$0xff]   ;;  %v947_v8 = vld [vmem:[%s1175_s1 + $0x30] sm:$0xff]   ;;  %v948_v9 = vld [vmem:[%s1175_s1 + $0x68] sm:$0xff]   ;;  %s272_s24 = scalar_lea.vmem %s1177_s3, %s794_s16  ;;  %s278_s14 = scalar_lea.vmem %s1180_s6, %s794_s16 }
   0xe   : > { %888 = vmatprep.subr.bf16.mxu0 %v982_v1  ;;  %856 = vmatpush3.bf16.msra.mxu1 %v944_v5  ;;  %v950_v10 = vld [vmem:[%s1175_s1 + $0x28] sm:$0xff]   ;;  %v941_v11 = vld [vmem:[%s1178_s4 + $0x18] sm:$0xff]   ;;  %v952_v12 = vld [vmem:[%s1175_s1 + $0x60] sm:$0xff]   ;;  %s1115_s9 = scalar_lea.vmem %s1174_s0, %s926_s22 }
   0xf   : > { %857 = vmatprep.subr.bf16.mxu1 %v945_v6  ;;  %v943_v13 = vld [vmem:[%s1178_s4 + $0x10] sm:$0xff]   ;;  %v953_v14 = vld [vmem:[%s1175_s1 + $0x20] sm:$0xff]   ;;  %v955_v15 = vld [vmem:[%s1175_s1 + $0x58] sm:$0xff]  }
  0x10   : > { %v946_v16 = vld [vmem:[%s1178_s4 + $0x8] sm:$0xff]   ;;  %v956_v17 = vld [vmem:[%s1175_s1 + $0x18] sm:$0xff]   ;;  %v958_v18 = vld [vmem:[%s1175_s1 + $0x50] sm:$0xff]  }
  0x11   : > { %889 = vmatpush3.bf16.msra.mxu0 %v938_v2  ;;  %v949_v19 = vld [vmem:[%s1178_s4] sm:$0xff]   ;;  %v959_v20 = vld [vmem:[%s1175_s1 + $0x10] sm:$0xff]   ;;  %v961_v21 = vld [vmem:[%s1175_s1 + $0x48] sm:$0xff]  }
  0x12   : > { %890 = vmatprep.subr.bf16.mxu0 %v982_v1  ;;  %858 = vmatpush3.bf16.msra.mxu1 %v947_v8  ;;  %v951_v22 = vld [vmem:[%s272_s24] sm:$0xff]   ;;  %v954_v23 = vld [vmem:[%s1175_s1 + $0xb8] sm:$0xff]   ;;  %v962_v24 = vld [vmem:[%s1175_s1 + $0x8] sm:$0xff]  }
  0x13   : > { %859 = vmatprep.subr.bf16.mxu1 %v948_v9  ;;  %v964_v25 = vld [vmem:[%s1175_s1 + $0x40] sm:$0xff]   ;;  %v957_v28 = vld [vmem:[%s1175_s1 + $0xb0] sm:$0xff]   ;;  %v960_v30 = vld [vmem:[%s1175_s1 + $0xa8] sm:$0xff]  }
  0x14   : > { %v969_v26 = vld [vmem:[%s1115_s9 + $0x4] ss:$12 sps:$4 sm:$0xff]   ;;  %v967_v29 = vld [vmem:[%s1115_s9] ss:$12 sps:$4 sm:$0xff]   ;;  %v966_v32 = vld [vmem:[%s1175_s1 + $0x98] sm:$0xff]  }
  0x15   : > { %891 = vmatpush3.bf16.msra.mxu0 %v939_v4  ;;  %v965_v27 = vld [vmem:[%s1175_s1] sm:$0xff]   ;;  %645 = vmatprep.mubr.bf16.mxu1 %v969_v26  ;;  %v970_v33 = vld [vmem:[%s1175_s1 + $0x90] sm:$0xff]   ;;  %v971_v34 = vld [vmem:[%s1175_s1 + $0x88] sm:$0xff]  }
  0x16   : > { %892 = vmatprep.subr.bf16.mxu0 %v982_v1  ;;  %860 = vmatpush3.bf16.msra.mxu1 %v950_v10  ;;  %v963_v31 = vld [vmem:[%s1175_s1 + $0xa0] sm:$0xff]   ;;  %v973_v36 = vld [vmem:[%s1115_s9 + $0x8] ss:$12 sps:$4 sm:$0xff]  }
  0x17   : > { %861 = vmatprep.subr.bf16.mxu1 %v952_v12  ;;  %v972_v35 = vld [vmem:[%s1175_s1 + $0x80] sm:$0xff]  }
  0x18   : > { %v806_v46 = vld [vmem:[%s1176_s2] ss:$0 sm:$0xff] }
  0x19   : > { %893 = vmatpush3.bf16.msra.mxu0 %v940_v7  ;;  %v834_v54 = vld [vmem:[%s1179_s5] ss:$0 sm:$0xff] }
  0x1a   : > { %894 = vmatprep.subr.bf16.mxu0 %v982_v1  ;;  %862 = vmatpush3.bf16.msra.mxu1 %v953_v14 }
  0x1b   : > { %863 = vmatprep.subr.bf16.mxu1 %v955_v15 }
  0x1d   : > { %895 = vmatpush3.bf16.msra.mxu0 %v941_v11 }
  0x1e   : > { %896 = vmatprep.subr.bf16.mxu0 %v982_v1  ;;  %864 = vmatpush3.bf16.msra.mxu1 %v956_v17 }
  0x1f   : > { %865 = vmatprep.subr.bf16.mxu1 %v958_v18 }
  0x21   : > { %897 = vmatpush3.bf16.msra.mxu0 %v943_v13 }
  0x22   : > { %898 = vmatprep.subr.bf16.mxu0 %v982_v1  ;;  %866 = vmatpush3.bf16.msra.mxu1 %v959_v20 }
  0x23   : > { %867 = vmatprep.subr.bf16.mxu1 %v961_v21 }
  0x25   : > { %899 = vmatpush3.bf16.msra.mxu0 %v946_v16 }
  0x26   : > { %900 = vmatprep.subr.bf16.mxu0 %v982_v1  ;;  %868 = vmatpush3.bf16.msra.mxu1 %v962_v24 }
  0x27   : > { %869 = vmatprep.subr.bf16.mxu1 %v964_v25 }
  0x29   : > { %901 = vmatpush3.bf16.msra.mxu0 %v949_v19 }
  0x2a   : > { %906 = vmatprep.subr.bf16.mxu0 %v982_v1  ;;  %870 = vmatpush3.bf16.msra.mxu1 %v965_v27 }
  0x2c   : > { %903 = vmatmul.mubr.bf16.vlgmr.msra.gmra.mxu0 %v951_v22 }
  0x2d   : > { %907 = vmatpush3.bf16.msra.mxu0 %v954_v23  ;;  %922 = vmatprep.mubr.msk.bf16.mxu0 %vm983_vm0, %v982_v1 }
  0x2e   : > { %908 = vmatprep.subr.bf16.mxu0 %v982_v1  ;;  %646 = vmatmul.mubr.bf16.vlgmr.msra.gmra.mxu1 %v967_v29 }
  0x31   : > { %909 = vmatpush3.bf16.msra.mxu0 %v957_v28 }
  0x32   : > { %910 = vmatprep.subr.bf16.mxu0 %v982_v1 }
  0x35   : > { %911 = vmatpush3.bf16.msra.mxu0 %v960_v30 }
  0x36   : > { %912 = vmatprep.subr.bf16.mxu0 %v982_v1 }
  0x39   : > { %913 = vmatpush3.bf16.msra.mxu0 %v963_v31 }
  0x3a   : > { %914 = vmatprep.subr.bf16.mxu0 %v982_v1 }
  0x3d   : > { %915 = vmatpush3.bf16.msra.mxu0 %v966_v32 }
  0x3e   : > { %916 = vmatprep.subr.bf16.mxu0 %v982_v1 }
  0x41   : > { %917 = vmatpush3.bf16.msra.mxu0 %v970_v33 }
  0x42   : > { %918 = vmatprep.subr.bf16.mxu0 %v982_v1 }
  0x45   : > { %919 = vmatpush3.bf16.msra.mxu0 %v971_v34 }
  0x46   : > { %920 = vmatprep.subr.bf16.mxu0 %v982_v1 }
  0x49   : > { %921 = vmatpush3.bf16.msra.mxu0 %v972_v35 }
  0x4c   : > { %923 = vmatmul.mubr.bf16.vlgmr.msra.gmra.mxu0 %v973_v36 }
  0xec   : > { %v439_v37 = vpop.f32.mrf.mxu0 }
  0xee   : > { %v904_v38 = vpop.f32.mrf.mxu0  ;;  %v871_v41 = vpop.f32.mrf.mxu1 }
  0xf0   : > { %v442_v39 = vpop.f32.mrf.mxu0  ;;  %v872_v42 = vpop.f32.mrf.mxu1 }
  0xf1   : > { %v873_v44 = vadd.f32 %v872_v42, %v871_v41 }
  0xf2   : > { %v905_v40 = vpop.f32.mrf.mxu0  ;;  %v874_v43 = vpop.f32.mrf.mxu1 }
  0xf3   : > { %v648_v48 = vadd.f32 %v873_v44, %v806_v46 }
  0xf4   : > { %v875_v45 = vpop.f32.mrf.mxu1 }
  0xf5   : > { %v876_v47 = vadd.f32 %v875_v45, %v874_v43 }
  0xf7   : > { %v651_v53 = vadd.f32 %v876_v47, %v806_v46 }
 0x10c   : > { %v688_v49 = vpop.f32.mrf.mxu0 }
 0x10d   : > { %v689_v50 = vadd.f32 %v688_v49, %v648_v48 }
 0x10e   : > { %v924_v51 = vpop.f32.mrf.mxu0 }
 0x10f   : > { %v695_v52 = vadd.f32 %v689_v50, %v439_v37 }
 0x110   : > { %v691_v55 = vpop.f32.mrf.mxu0 }
 0x111   : > { %v692_v56 = vadd.f32 %v691_v55, %v651_v53  ;;  %v704_v58 = vadd.f32 %v834_v54, %v695_v52 }
 0x112   : > { %v925_v57 = vpop.f32.mrf.mxu0 }
 0x113   : > { %v696_v59 = vadd.f32 %v692_v56, %v442_v39  ;;  %v706_v61 = vmax.f32 %v704_v58, 0.0 }
 0x115   : > { %v705_v60 = vadd.f32 %v834_v54, %v696_v59 }
 0x117   : > { %v707_v62 = vmax.f32 %v705_v60, 0.0 }
 0x119   : > { %v844_v63 = vpack.c.bf16 %v707_v62, %v706_v61 }
 0x11b   : > { %845 = vst [vmem:[%s278_s14] sm:$0xff] %v844_v63  }
 0x11c PF: > { %s16_s21 = sadd.s32 1, %s980_s21  }
 0x11d   : > { %p13_p4 = scmp.ge.s32.totalorder %s16_s21, 4  }
 0x11f   :  { %15 = sbr.rel (!%p13_p4) target bundleno = 1 (0x1), region = 77 }

// kernel: cifar_resnet_forward.15
= control target key start
LH: loop header
LB: loop body
LE: loop exit
PB: predicated region body
PF: predicated region fallthrough
CT: control target
= control target key end

     0   :  { %v256_v1 = vmov 0.0   ;;  %vm257_vm0 = vmmov 0   ;;  %s315_s0 = inlined_call_operand.vmem [shape: bf16[2,16,128], index: 0, kind: input, shape index: {}]   ;;  %s316_s1 = inlined_call_operand.vmem [shape: bf16[128,128], index: 1, kind: input, shape index: {}]   ;;  %s317_s2 = inlined_call_operand.vmem [shape: f32[1,128], index: 2, kind: input, shape index: {}]   ;;  %s318_s3 = inlined_call_operand.hbm [shape: f32[2,128], index: 3, kind: output, shape index: {}]  }
   0x1   :  { %v226_v0 = vld [vmem:[%s316_s1 + $0x38] sm:$0xff]   ;;  %203 = vmatprep.subr.bf16.mxu0 %v256_v1  ;;  %v227_v2 = vld [vmem:[%s316_s1 + $0x30] sm:$0xff]   ;;  %219 = vmatprep.mubr.msk.bf16.mxu0 %vm257_vm0, %v256_v1  ;;  %v228_v3 = vld [vmem:[%s316_s1 + $0x28] sm:$0xff]  }
   0x2   :  { %204 = vmatpush3.bf16.msra.mxu0 %v226_v0  ;;  %v186_v4 = vld [vmem:[%s315_s0] sm:$0xff]   ;;  %v193_v5 = vld [vmem:[%s315_s0 + $0x8] sm:$0xff]  }
   0x3   :  { %205 = vmatprep.subr.bf16.mxu0 %v256_v1  ;;  %v187_v6 = vunpack.c.l.bf16 %v186_v4  ;;  %v188_v7 = vunpack.c.h.bf16 %v186_v4  ;;  %v191_v8 = vunpack.c.l.bf16 %v193_v5  ;;  %v192_v9 = vunpack.c.h.bf16 %v193_v5 }
   0x6   :  { %206 = vmatpush3.bf16.msra.mxu0 %v227_v2 }
   0x7   :  { %207 = vmatprep.subr.bf16.mxu0 %v256_v1 }
   0x8   :  { %8 = vsyncpa [#allocation3], 0  ;;  %v229_v10 = vld [vmem:[%s316_s1 + $0x20] sm:$0xff]   ;;  %v24_v11 = vadd.f32 %v188_v7, %v187_v6  ;;  %v31_v12 = vadd.f32 %v192_v9, %v191_v8  ;;  %v230_v15 = vld [vmem:[%s316_s1 + $0x18] sm:$0xff]   ;;  %vm69_vm1 = vcmask 1041409   ;;  %s258_s6 = smov [#allocation2]  }
   0x9   :  { %v231_v20 = vld [vmem:[%s316_s1 + $0x10] sm:$0xff]   ;;  %v232_v25 = vld [vmem:[%s316_s1 + $0x8] sm:$0xff]   ;;  %v233_v30 = vld [vmem:[%s316_s1] sm:$0xff]   ;;  %s168_s7 = sshll.u32 %s258_s6, 4  ;;  %s169_s7 = int_to_ptr.vmem [resolvable:$true] %s168_s7 }
   0xa   :  { %208 = vmatpush3.bf16.msra.mxu0 %v228_v3  ;;  %v25_v13 = vrot.slane %v24_v11, 4  ;;  %v32_v14 = vrot.slane %v31_v12, 4  ;;  %v176_v37 = vld [vmem:[%s317_s2] ss:$0 sm:$0xff]  ;;  %s234_s1 = scalar_lea.vmem %s169_s7, 32  ;;  %p239_p1 = scmp.lt.s32.totalorder %s169_s7, %s169_s7 }
   0xb   :  { %209 = vmatprep.subr.bf16.mxu0 %v256_v1  ;;  %p235_p0 = scmp.ne.s32.totalorder %s169_s7, %s234_s1  ;;  %p240_p2 = scmp.lt.s32.totalorder %s234_s1, %s234_s1 }
   0xc   :  { %v26_v16 = vadd.f32 %v25_v13, %v24_v11  ;;  %v33_v17 = vadd.f32 %v32_v14, %v31_v12 }
   0xd   :  { %p241_p3 = por %p240_p2, %p239_p1 }
   0xe   :  { %210 = vmatpush3.bf16.msra.mxu0 %v229_v10  ;;  %v27_v18 = vrot.slane %v26_v16, 2  ;;  %v34_v19 = vrot.slane %v33_v17, 2 }
   0xf   :  { %211 = vmatprep.subr.bf16.mxu0 %v256_v1  ;;  %p242_p4 = pnand %p241_p3, %p235_p0 }
  0x10   :  { %v28_v21 = vadd.f32 %v27_v18, %v26_v16  ;;  %v35_v22 = vadd.f32 %v34_v19, %v33_v17 }
  0x12   :  { %212 = vmatpush3.bf16.msra.mxu0 %v230_v15  ;;  %v29_v23 = vrot.slane %v28_v21, 1  ;;  %v36_v24 = vrot.slane %v35_v22, 1 }
  0x13   :  { %213 = vmatprep.subr.bf16.mxu0 %v256_v1 }
  0x14   :  { %v30_v26 = vadd.f32 %v29_v23, %v28_v21  ;;  %v37_v27 = vadd.f32 %v36_v24, %v35_v22 }
  0x16   :  { %214 = vmatpush3.bf16.msra.mxu0 %v231_v20  ;;  %v38_v28 = vmul.f32 0.0625, %v30_v26  ;;  %v39_v29 = vmul.f32 0.0625, %v37_v27 }
  0x17   :  { %215 = vmatprep.subr.bf16.mxu0 %v256_v1 }
  0x18   :  { %v40_v31 = vpack.c.bf16 %v38_v28, %v38_v28  ;;  %v41_v32 = vpack.c.bf16 %v39_v29, %v39_v29 }
  0x1a   :  { %216 = vmatpush3.bf16.msra.mxu0 %v232_v25  ;;  %v67_v33 = vunpack.c.l.b16 %v40_v31  ;;  %v68_v34 = vunpack.c.l.b16 %v41_v32 }
  0x1b   :  { %217 = vmatprep.subr.bf16.mxu0 %v256_v1 }
  0x1c   :  { %v70_v35 = vsel %vm69_vm1, %v68_v34, %v67_v33 }
  0x1d   :  { %v71_v36 = vpack.c.b16 %v70_v35, %v70_v35 }
  0x1e   :  { %218 = vmatpush3.bf16.msra.mxu0 %v233_v30 }
  0x21   :  { %220 = vmatmul.mubr.bf16.vlgmr.msra.gmra.mxu0 %v71_v36 }
  0xe1   :  { %v155_v38 = vpop.f32.mrf.mxu0 }
  0xe2   :  { %v156_v39 = vadd.f32 %v176_v37, %v155_v38 }
  0xe3   :  { %v221_v40 = vpop.f32.mrf.mxu0 }
  0xe4   :  { %161 = vst [vmem:[#allocation2] sm:$0x3] %v156_v39 }
  0xe5   :  { %v158_v41 = vpop.f32.mrf.mxu0 }
  0xe6   :  { %245 = shalt.err (!%p242_p4)
}
  0xe7   :  { %171 = dma.vmem_to_hbm [thread:$0]  %s169_s7, 32, %s318_s3, [#allocation3]   ;;  %v222_v42 = vpop.f32.mrf.mxu0 }
  0xe8   :  { %254 = dma.done.wait [#allocation3], 32  }
  0xe9   :  { %255 = vsyncadd [#allocation3], 4294967264 }
  0xea   :  { %175 = vsyncpa [#allocation3], 1 }

</bundles_post_ra>
